<compile_context>
chip_gen: v7x
topology: tpu7x:2x2x1
jax: 0.10.0
libtpu: 0.0.40
codegen_flags: <defaults>
</compile_context>

<pallas_src>
import functools

import jax
import jax.numpy as jnp
from jax.experimental import pallas as pl
from jax.experimental.pallas import tpu as pltpu

PRELU_ALPHA = 0.2  # deterministic PReLU slope


def _apply_act(y, act, alpha):
    if act == "prelu":
        return jnp.where(y >= 0, y, alpha * y)
    if act == "relu":
        return jnp.maximum(y, 0.0)
    if act == "sigmoid":
        return jax.nn.sigmoid(y)
    return y


# ----------------------------- fused matmul kernel ---------------------------

def _fused_mm_kernel(*refs, acts, alpha, has_res):
    # refs = (patches, (w, b) per stage, [residual], out)
    a_ref = refs[0]
    out_ref = refs[-1]
    x = a_ref[...].astype(jnp.bfloat16)               # (K, TM), spatial on lanes
    y = None
    for i, act in enumerate(acts):
        w = refs[1 + 2 * i][...].astype(jnp.bfloat16)  # (Co, K)
        b = refs[2 + 2 * i][...]                       # (Co, 1)
        y = jnp.dot(w, x, preferred_element_type=jnp.float32) + b
        y = _apply_act(y, act, alpha)
        if i + 1 < len(acts):
            x = y.astype(jnp.bfloat16)
    if has_res:
        y = y + refs[1 + 2 * len(acts)][...]
    out_ref[...] = y


def fused_matmul(a, stages, residual=None, alpha=PRELU_ALPHA):
    """a: (K, M).  stages: [(w (Co, K_i), b (Co,), act), ...] chained pointwise.
    residual (Co_last, M) is added to the last stage.  Returns (Co_last, M) f32."""
    K, M = a.shape
    Mpad = -(-M // 128) * 128
    if Mpad != M:                                   # lane pad (no-op for typical SR sizes)
        a = jnp.pad(a, ((0, 0), (0, Mpad - M)))
        if residual is not None:
            residual = jnp.pad(residual, ((0, 0), (0, Mpad - M)))
    TM = Mpad
    for cand in (1024, 512, 256, 128):              # >=2 blocks when possible (v7x megacore)
        if Mpad % cand == 0 and Mpad // cand >= 2:
            TM = cand
            break

    acts = tuple(s[2] for s in stages)
    in_specs = [pl.BlockSpec((K, TM), lambda i: (0, i))]
    inputs = [a]
    for w, b, _ in stages:
        Co, Kw = w.shape
        in_specs.append(pl.BlockSpec((Co, Kw), lambda i: (0, 0)))
        in_specs.append(pl.BlockSpec((Co, 1), lambda i: (0, 0)))
        inputs.append(w.astype(jnp.bfloat16))
        inputs.append(b.reshape(Co, 1).astype(jnp.float32))
    Cout = stages[-1][0].shape[0]
    has_res = residual is not None
    if has_res:
        in_specs.append(pl.BlockSpec((Cout, TM), lambda i: (0, i)))
        inputs.append(residual.astype(jnp.float32))

    out = pl.pallas_call(
        functools.partial(_fused_mm_kernel, acts=acts, alpha=alpha, has_res=has_res),
        out_shape=jax.ShapeDtypeStruct((Cout, Mpad), jnp.float32),
        grid=(Mpad // TM,),
        in_specs=in_specs,
        out_specs=pl.BlockSpec((Cout, TM), lambda i: (0, i)),
        compiler_params=pltpu.CompilerParams(dimension_semantics=("parallel",)),
    )(*inputs)
    return out[:, :M] if Mpad != M else out


# ------------------------- fused CCA + c5 + residual kernel -------------------

def _cca_c5_kernel(x_ref, sb_ref, sbt_ref, w1_ref, b1_ref, w2_ref, b2_ref,
                   w5_ref, b5_ref, res_ref, o_ref, *, inv_hw, cr):
    x = x_ref[...]                                        # (C, M) f32
    sb = sb_ref[...]                                      # (M, N) one-hot segments
    mean = jnp.dot(x, sb, preferred_element_type=jnp.float32) * inv_hw       # (C, N)
    mean_sq = jnp.dot(x * x, sb, preferred_element_type=jnp.float32) * inv_hw
    var = jnp.maximum(mean_sq - mean * mean, 0.0)
    y = jnp.sqrt(var) + mean                              # stdv_channels + avg_pool

    w1t = w1_ref[...]                                     # (C, Cr)
    if cr == 1:
        # Tiny contraction stays on the VPU (an MXU matmul here would be ~1% utilised).
        z1 = jnp.sum(w1t * y, axis=0, keepdims=True) + b1_ref[...]           # (1, N)
        z1 = jnp.maximum(z1, 0.0)
        z2 = w2_ref[...] * z1 + b2_ref[...]                                  # (C, N)
    else:
        z1 = jax.lax.dot_general(w1t, y, (((0,), (0,)), ((), ())),
                                 preferred_element_type=jnp.float32) + b1_ref[...]
        z1 = jnp.maximum(z1, 0.0)
        z2 = jnp.dot(w2_ref[...], z1, preferred_element_type=jnp.float32) + b2_ref[...]
    scale = jax.nn.sigmoid(z2)                            # (C, N)

    scale_m = jnp.dot(scale, sbt_ref[...], preferred_element_type=jnp.float32)  # (C, M)
    xs = (x * scale_m).astype(jnp.bfloat16)
    w5 = w5_ref[...].astype(jnp.bfloat16)
    out = jnp.dot(w5, xs, preferred_element_type=jnp.float32) + b5_ref[...]
    o_ref[...] = out + res_ref[...]


def cca_c5_residual(x_cm, shape, w1, b1, w2, b2, w5, b5, residual):
    """x * sigmoid(W2 relu(W1 (std+mean)+b1)+b2), then c5 1x1 conv + residual add."""
    C, M = x_cm.shape
    N, H, W = shape
    HW = H * W
    Cr = w1.shape[0]
    seg = jnp.arange(M, dtype=jnp.int32) // HW
    sb = (seg[:, None] == jnp.arange(N, dtype=jnp.int32)[None, :]).astype(jnp.float32)

    def full(*dims):
        return pl.BlockSpec(dims, lambda i: (0,) * len(dims))

    # TODO(synk): for very large H*W this single-block kernel should be tiled over
    # batch / spatial chunks (two-pass stats) to respect the VMEM budget on v7x.
    return pl.pallas_call(
        functools.partial(_cca_c5_kernel, inv_hw=1.0 / HW, cr=Cr),
        out_shape=jax.ShapeDtypeStruct((C, M), jnp.float32),
        grid=(1,),
        in_specs=[full(C, M), full(M, N), full(N, M),
                  full(C, Cr), full(Cr, 1), full(C, Cr), full(C, 1),
                  full(C, C), full(C, 1), full(C, M)],
        out_specs=full(C, M),
    )(x_cm, sb, sb.T,
      w1.reshape(Cr, C).T, b1.reshape(Cr, 1),
      w2.reshape(C, Cr), b2.reshape(C, 1),
      w5.reshape(C, C), b5.reshape(C, 1), residual)


# ------------------------------ conv wrappers --------------------------------

def _im2col(x_cm, shape, kh, kw, pad):
    """(C, N*H*W) -> bf16 patches (C*kh*kw, N*Ho*Wo) for a stride-1 correlation."""
    C, _ = x_cm.shape
    N, H, W = shape
    (pt, pb), (pleft, pr) = pad
    x = x_cm.reshape(C, N, H, W).astype(jnp.bfloat16)
    if pt or pb or pleft or pr:
        x = jnp.pad(x, ((0, 0), (0, 0), (pt, pb), (pleft, pr)))
    Ho = H + pt + pb - kh + 1
    Wo = W + pleft + pr - kw + 1
    cols = [x[:, :, i:i + Ho, j:j + Wo] for i in range(kh) for j in range(kw)]
    patches = jnp.stack(cols, axis=1).reshape(C * kh * kw, N * Ho * Wo)
    return patches, (N, Ho, Wo)


def conv2d_cm(x_cm, shape, w, b, padding=0, act=None, extra_stage=None,
              residual=None, alpha=PRELU_ALPHA):
    """Stride-1 Conv2d in CM layout.  w: (O, I, KH, KW), b: (O,).  `extra_stage`
    fuses a following 1x1 conv; `residual` is added to the (last-stage) output."""
    O, I, KH, KW = w.shape
    if KH == 1 and KW == 1 and padding == 0:
        patches, oshape = x_cm, shape            # pointwise conv: zero layout glue
    else:
        patches, oshape = _im2col(x_cm, shape, KH, KW,
                                  ((padding, padding), (padding, padding)))
    stages = [(w.reshape(O, I * KH * KW), b, act)]
    if extra_stage is not None:
        w2, b2, act2 = extra_stage
        O2, I2, _, _ = w2.shape
        stages.append((w2.reshape(O2, I2), b2, act2))
    return fused_matmul(patches, stages, residual=residual, alpha=alpha), oshape


def deconv2d_cm(x_cm, shape, w, b, stride, padding, act, alpha=PRELU_ALPHA):
    """ConvTranspose2d (PyTorch weight layout (I, O, K, K)) via sub-kernel
    decomposition: stride^2 stride-1 convs on the undilated input, interleaved."""
    C, _ = x_cm.shape
    N, H, W = shape
    Cin, Cout, K, _K2 = w.shape
    s, p = stride, padding

    def dim_cfg(r, L):
        nk = len(range(r, K, s))                        # taps for this phase
        qmin = max(0, -((r - p) // s))                  # ceil((p - r) / s), clamped
        qmax = (L - 1) + (K - p - 1 - r) // s
        assert qmax - qmin + 1 == L, "unsupported deconv geometry"
        pb = max(0, (nk - 1) - qmin)
        pa = max(0, qmax - (L - 1))
        start = qmin + pb - (nk - 1)
        off = qmin * s + r - p                          # output offset of this phase
        return dict(r=r, nk=nk, pb=pb, pa=pa, start=start, off=off)

    ycfgs = [dim_cfg(r, H) for r in range(s)]
    xcfgs = [dim_cfg(r, W) for r in range(s)]
    gkey = lambda c: (c["nk"], c["pb"], c["pa"], c["start"])
    ygroups, xgroups = {}, {}
    for c in ycfgs:
        ygroups.setdefault(gkey(c), []).append(c)
    for c in xcfgs:
        xgroups.setdefault(gkey(c), []).append(c)

    subs = {}
    # Phases that share patch geometry are batched into ONE matmul (all s^2 of them
    # for upscale 2), with their sub-kernel weight matrices stacked on the Cout axis.
    for (nky, pt, pbot, sty), ycs in ygroups.items():
        for (nkx, pleft, pr, stx), xcs in xgroups.items():
            patches, (_, Hv, Wv) = _im2col(x_cm, shape, nky, nkx,
                                           ((pt, pbot), (pleft, pr)))
            wmats, offs = [], []
            for yc in ycs:
                for xc in xcs:
                    wsub = jnp.flip(w[:, :, yc["r"]::s, xc["r"]::s], axis=(2, 3))
                    wmats.append(wsub.transpose(1, 0, 2, 3).reshape(Cout, C * nky * nkx))
                    offs.append((yc["off"], xc["off"]))
            wall = jnp.concatenate(wmats, axis=0)            # (G*Cout, K')
            ball = jnp.tile(b, len(offs))
            out_all = fused_matmul(patches, [(wall, ball, act)], alpha=alpha)
            out_all = out_all.reshape(len(offs), Cout, N, Hv, Wv)
            for gi, (oy, ox) in enumerate(offs):
                subs[(oy, ox)] = out_all[gi, :, :, sty:sty + H, stx:stx + W]

    rows = []
    for oy in range(s):      # pixel-shuffle interleave (stack + reshape, no transposes)
        r = jnp.stack([subs[(oy, ox)] for ox in range(s)], axis=-1)   # (Cout,N,H,W,s)
        rows.append(r.reshape(Cout, N, H, W * s))
    out = jnp.stack(rows, axis=3).reshape(Cout, N, H * s, W * s)
    return out.reshape(Cout, N * H * s * W * s), (N, H * s, W * s)


# ------------------------------ CAON forward ----------------------------------

def _imd_module(inp, shape, g, dist):
    out_c1, _ = conv2d_cm(inp, shape, g["c1_w"], g["c1_b"], 0, "prelu")
    d1, r1 = out_c1[:dist], out_c1[dist:]
    out_c2, _ = conv2d_cm(r1, shape, g["c2_w"], g["c2_b"], 1, "prelu")
    d2, r2 = out_c2[:dist], out_c2[dist:]
    out_c3, _ = conv2d_cm(r2, shape, g["c3_w"], g["c3_b"], 1, "prelu")
    d3, r3 = out_c3[:dist], out_c3[dist:]
    out_c4, _ = conv2d_cm(r3, shape, g["c4_w"], g["c4_b"], 1, None)
    out = jnp.concatenate([d1, d2, d3, out_c4], axis=0)
    # CCA + c5 1x1 conv + residual add: one Pallas kernel.
    return cca_c5_residual(out, shape, g["cca_w1"], g["cca_b1"],
                           g["cca_w2"], g["cca_b2"], g["c5_w"], g["c5_b"], inp)


def caon_forward(x, params, *, num_steps, upscale, nf):
    N, Cin, H, W = x.shape
    rgb_mean = jnp.array([0.4488, 0.4371, 0.404], jnp.float32).reshape(3, 1)
    # One transpose at the graph boundary; everything downstream is channel-major.
    x_cm = x.transpose(1, 0, 2, 3).reshape(Cin, N * H * W) - rgb_mean   # sub_mean
    Ho, Wo = H * upscale, W * upscale
    # TODO(synk): bilinear upsample kept as plain-JAX glue (jax.image.resize matches
    # PyTorch align_corners=False for integer upscaling).
    inter = jax.image.resize(x_cm.reshape(Cin, N, H, W), (Cin, N, Ho, Wo),
                             method="bilinear")
    out_res = inter.reshape(Cin, N * Ho * Wo) + rgb_mean   # inter_res + add_mean (reused)

    # conv_in (3x3, prelu) fused with feat_in (1x1, prelu) in a single kernel.
    feat, shape = conv2d_cm(x_cm, (N, H, W), params["conv_in_w"], params["conv_in_b"],
                            1, "prelu",
                            extra_stage=(params["feat_in_w"], params["feat_in_b"], "prelu"))

    deconv_cfg = {2: (6, 2, 2), 3: (7, 3, 2), 4: (8, 4, 2), 8: (12, 8, 2), 16: (20, 16, 2)}
    _dk, ds, dp = deconv_cfg[upscale]
    dist = nf // 4

    outs = []
    last_hidden = feat    # IMDBlock.should_reset: hidden starts as a copy of the input
    for _ in range(num_steps):
        cat = jnp.concatenate([feat, last_hidden], axis=0)
        h, _ = conv2d_cm(cat, shape, params["compress_w"], params["compress_b"], 0, "prelu")
        for g in params["imdm"]:
            h = _imd_module(h, shape, g, dist)
        last_hidden = h
        hd, up_shape = deconv2d_cm(h, shape, params["out_w"], params["out_b"],
                                   ds, dp, "prelu")
        # conv_out (3x3) with the (inter_res + rgb_mean) residual fused into the kernel.
        o_cm, _ = conv2d_cm(hd, up_shape, params["conv_out_w"], params["conv_out_b"],
                            1, None, residual=out_res)
        outs.append(o_cm.reshape(-1, N, Ho, Wo).transpose(1, 0, 2, 3))
    return outs


# ------------------------------ parameter init --------------------------------

def init_params(key, in_ch, out_ch, nf, num_groups, upscale):
    deconv_cfg = {2: (6, 2, 2), 3: (7, 3, 2), 4: (8, 4, 2), 8: (12, 8, 2), 16: (20, 16, 2)}
    dk, _, _ = deconv_cfg[upscale]
    keys = iter(jax.random.split(key, 256))

    def nrm(shape, scale=0.05):
        return (scale * jax.random.normal(next(keys), shape)).astype(jnp.float32)

    dist = nf // 4
    rem = nf - dist
    cca_c = dist * 4
    cca_r = max(1, cca_c // 16)  # reduction=16

    p = {
        "conv_in_w": nrm((4 * nf, in_ch, 3, 3)), "conv_in_b": nrm((4 * nf,), 0.01),
        "feat_in_w": nrm((nf, 4 * nf, 1, 1)), "feat_in_b": nrm((nf,), 0.01),
        "compress_w": nrm((nf, 2 * nf, 1, 1)), "compress_b": nrm((nf,), 0.01),
        "out_w": nrm((nf, nf, dk, dk)), "out_b": nrm((nf,), 0.01),  # ConvTranspose2d (in,out,k,k)
        "conv_out_w": nrm((out_ch, nf, 3, 3)), "conv_out_b": nrm((out_ch,), 0.01),
        "imdm": [],
    }
    for _ in range(num_groups):
        p["imdm"].append({
            "c1_w": nrm((nf, nf, 1, 1)), "c1_b": nrm((nf,), 0.01),
            "c2_w": nrm((nf, rem, 3, 3)), "c2_b": nrm((nf,), 0.01),
            "c3_w": nrm((nf, rem, 3, 3)), "c3_b": nrm((nf,), 0.01),
            "c4_w": nrm((dist, rem, 3, 3)), "c4_b": nrm((dist,), 0.01),
            "c5_w": nrm((nf, nf, 1, 1)), "c5_b": nrm((nf,), 0.01),
            "cca_w1": nrm((cca_r, cca_c, 1, 1)), "cca_b1": nrm((cca_r,), 0.01),
            "cca_w2": nrm((cca_c, cca_r, 1, 1)), "cca_b2": nrm((cca_c,), 0.01),
        })
    return p


# ----------------------------------- main --------------------------------------

if __name__ == "__main__":
    in_ch, out_ch = 3, 3
    nf = 16          # num_features (distilled = 4, CCA channel = 16, reduction 16 -> Cr=1)
    num_steps = 2
    num_groups = 2
    upscale = 2

    key = jax.random.PRNGKey(0)
    kx, kp = jax.random.split(key)
    x = jax.random.normal(kx, (2, in_ch, 8, 8), jnp.float32)
    params = init_params(kp, in_ch, out_ch, nf, num_groups, upscale)

    fwd = jax.jit(functools.partial(caon_forward, num_steps=num_steps,
                                    upscale=upscale, nf=nf))
    outs = fwd(x, params)
    outs = [jax.block_until_ready(o) for o in outs]

    assert len(outs) == num_steps
    for o in outs:
        assert o.shape == (2, out_ch, 8 * upscale, 8 * upscale), o.shape
        assert bool(jnp.all(jnp.isfinite(o)))
    print("KERNEL_OK")
</pallas_src>

<mosaic_0001>
module attributes {stable_mosaic.version = 11 : i64} {
  func.func @_fused_mm_kernel(%arg0: i32, %arg1: memref<32x128xf32, #tpu.memory_space<vmem>>, %arg2: memref<16x32xbf16, #tpu.memory_space<vmem>>, %arg3: memref<16x1xf32, #tpu.memory_space<vmem>>, %arg4: memref<16x128xf32, #tpu.memory_space<vmem>>) attributes {dimension_semantics = [#tpu.dimension_semantics<parallel>], iteration_bounds = array<i64: 1>, scalar_prefetch = 0 : i64, scratch_operands = 0 : i64, tpu.core_type = #tpu.core_type<tc>, window_params = [{transform_indices = @transform_0, window_bounds = array<i64: 32, 128>}, {pipeline_mode = #tpu.pipeline_mode<synchronous>, transform_indices = @transform_1, window_bounds = array<i64: 16, 32>}, {pipeline_mode = #tpu.pipeline_mode<synchronous>, transform_indices = @transform_2, window_bounds = array<i64: 16, 1>}, {transform_indices = @transform_3, window_bounds = array<i64: 16, 128>}]} {
    %c0 = arith.constant 0 : index
    %c0_0 = arith.constant 0 : index
    %0 = vector.load %arg1[%c0, %c0_0] : memref<32x128xf32, #tpu.memory_space<vmem>>, vector<32x128xf32>
    %1 = arith.truncf %0 : vector<32x128xf32> to vector<32x128xbf16>
    %c0_1 = arith.constant 0 : index
    %c0_2 = arith.constant 0 : index
    %2 = vector.load %arg2[%c0_1, %c0_2] : memref<16x32xbf16, #tpu.memory_space<vmem>>, vector<16x32xbf16>
    %c0_3 = arith.constant 0 : index
    %c0_4 = arith.constant 0 : index
    %3 = vector.load %arg3[%c0_3, %c0_4] : memref<16x1xf32, #tpu.memory_space<vmem>>, vector<16x1xf32>
    %cst = arith.constant dense<0.000000e+00> : vector<16x128xf32>
    %4 = tpu.matmul %2, %1, %cst {dimension_numbers = #tpu.dot_dimension_numbers<[1], [0], [0], [1], [0, 0, 1, 1], [], []>} : vector<16x32xbf16>, vector<32x128xbf16>, vector<16x128xf32> -> vector<16x128xf32>
    %5 = vector.broadcast %3 : vector<16x1xf32> to vector<16x128xf32>
    %6 = arith.addf %4, %5 : vector<16x128xf32>
    %cst_5 = arith.constant 0.000000e+00 : f32
    %7 = vector.broadcast %cst_5 : f32 to vector<16x128xf32>
    %8 = arith.cmpf oge, %6, %7 : vector<16x128xf32>
    %cst_6 = arith.constant 2.000000e-01 : f32
    %9 = vector.broadcast %cst_6 : f32 to vector<16x128xf32>
    %10 = arith.mulf %9, %6 : vector<16x128xf32>
    %11 = arith.select %8, %6, %10 : vector<16x128xi1>, vector<16x128xf32>
    %c0_7 = arith.constant 0 : index
    %c0_8 = arith.constant 0 : index
    %12 = vector.load %arg4[%c0_7, %c0_8] : memref<16x128xf32, #tpu.memory_space<vmem>>, vector<16x128xf32>
    tpu.vector_store %arg4[%c0_7, %c0_8], %11 {strides = array<i32>} : memref<16x128xf32, #tpu.memory_space<vmem>>, vector<16x128xf32>,
    return
  }
  func.func @transform_0(%arg0: i32) -> (i32, i32) {
    %c0_i32 = arith.constant 0 : i32
    %c0_i32_0 = arith.constant 0 : i32
    return %c0_i32, %arg0 : i32, i32
  }
  func.func @transform_1(%arg0: i32) -> (i32, i32) {
    %c0_i32 = arith.constant 0 : i32
    %c0_i32_0 = arith.constant 0 : i32
    %c0_i32_1 = arith.constant 0 : i32
    return %c0_i32, %c0_i32_0 : i32, i32
  }
  func.func @transform_2(%arg0: i32) -> (i32, i32) {
    %c0_i32 = arith.constant 0 : i32
    %c0_i32_0 = arith.constant 0 : i32
    %c0_i32_1 = arith.constant 0 : i32
    return %c0_i32, %c0_i32_0 : i32, i32
  }
  func.func @transform_3(%arg0: i32) -> (i32, i32) {
    %c0_i32 = arith.constant 0 : i32
    %c0_i32_0 = arith.constant 0 : i32
    return %c0_i32, %arg0 : i32, i32
  }
}

module attributes {stable_mosaic.version = 11 : i64} {
  func.func @_fused_mm_kernel(%arg0: i32, %arg1: memref<27x128xbf16, #tpu.memory_space<vmem>>, %arg2: memref<64x27xbf16, #tpu.memory_space<vmem>>, %arg3: memref<64x1xf32, #tpu.memory_space<vmem>>, %arg4: memref<16x64xbf16, #tpu.memory_space<vmem>>, %arg5: memref<16x1xf32, #tpu.memory_space<vmem>>, %arg6: memref<16x128xf32, #tpu.memory_space<vmem>>) attributes {dimension_semantics = [#tpu.dimension_semantics<parallel>], iteration_bounds = array<i64: 1>, scalar_prefetch = 0 : i64, scratch_operands = 0 : i64, tpu.core_type = #tpu.core_type<tc>, window_params = [{transform_indices = @transform_0, window_bounds = array<i64: 27, 128>}, {pipeline_mode = #tpu.pipeline_mode<synchronous>, transform_indices = @transform_1, window_bounds = array<i64: 64, 27>}, {pipeline_mode = #tpu.pipeline_mode<synchronous>, transform_indices = @transform_2, window_bounds = array<i64: 64, 1>}, {pipeline_mode = #tpu.pipeline_mode<synchronous>, transform_indices = @transform_3, window_bounds = array<i64: 16, 64>}, {pipeline_mode = #tpu.pipeline_mode<synchronous>, transform_indices = @transform_4, window_bounds = array<i64: 16, 1>}, {transform_indices = @transform_5, window_bounds = array<i64: 16, 128>}]} {
    %c0 = arith.constant 0 : index
    %c0_0 = arith.constant 0 : index
    %0 = vector.load %arg1[%c0, %c0_0] : memref<27x128xbf16, #tpu.memory_space<vmem>>, vector<27x128xbf16>
    %c0_1 = arith.constant 0 : index
    %c0_2 = arith.constant 0 : index
    %1 = vector.load %arg2[%c0_1, %c0_2] : memref<64x27xbf16, #tpu.memory_space<vmem>>, vector<64x27xbf16>
    %c0_3 = arith.constant 0 : index
    %c0_4 = arith.constant 0 : index
    %2 = vector.load %arg3[%c0_3, %c0_4] : memref<64x1xf32, #tpu.memory_space<vmem>>, vector<64x1xf32>
    %cst = arith.constant dense<0.000000e+00> : vector<64x128xf32>
    %3 = tpu.matmul %1, %0, %cst {dimension_numbers = #tpu.dot_dimension_numbers<[1], [0], [0], [1], [0, 0, 1, 1], [], []>} : vector<64x27xbf16>, vector<27x128xbf16>, vector<64x128xf32> -> vector<64x128xf32>
    %4 = vector.broadcast %2 : vector<64x1xf32> to vector<64x128xf32>
    %5 = arith.addf %3, %4 : vector<64x128xf32>
    %cst_5 = arith.constant 0.000000e+00 : f32
    %6 = vector.broadcast %cst_5 : f32 to vector<64x128xf32>
    %7 = arith.cmpf oge, %5, %6 : vector<64x128xf32>
    %cst_6 = arith.constant 2.000000e-01 : f32
    %8 = vector.broadcast %cst_6 : f32 to vector<64x128xf32>
    %9 = arith.mulf %8, %5 : vector<64x128xf32>
    %10 = arith.select %7, %5, %9 : vector<64x128xi1>, vector<64x128xf32>
    %11 = arith.truncf %10 : vector<64x128xf32> to vector<64x128xbf16>
    %c0_7 = arith.constant 0 : index
    %c0_8 = arith.constant 0 : index
    %12 = vector.load %arg4[%c0_7, %c0_8] : memref<16x64xbf16, #tpu.memory_space<vmem>>, vector<16x64xbf16>
    %c0_9 = arith.constant 0 : index
    %c0_10 = arith.constant 0 : index
    %13 = vector.load %arg5[%c0_9, %c0_10] : memref<16x1xf32, #tpu.memory_space<vmem>>, vector<16x1xf32>
    %cst_11 = arith.constant dense<0.000000e+00> : vector<16x128xf32>
    %14 = tpu.matmul %12, %11, %cst_11 {dimension_numbers = #tpu.dot_dimension_numbers<[1], [0], [0], [1], [0, 0, 1, 1], [], []>} : vector<16x64xbf16>, vector<64x128xbf16>, vector<16x128xf32> -> vector<16x128xf32>
    %15 = vector.broadcast %13 : vector<16x1xf32> to vector<16x128xf32>
    %16 = arith.addf %14, %15 : vector<16x128xf32>
    %cst_12 = arith.constant 0.000000e+00 : f32
    %17 = vector.broadcast %cst_12 : f32 to vector<16x128xf32>
    %18 = arith.cmpf oge, %16, %17 : vector<16x128xf32>
    %cst_13 = arith.constant 2.000000e-01 : f32
    %19 = vector.broadcast %cst_13 : f32 to vector<16x128xf32>
    %20 = arith.mulf %19, %16 : vector<16x128xf32>
    %21 = arith.select %18, %16, %20 : vector<16x128xi1>, vector<16x128xf32>
    %c0_14 = arith.constant 0 : index
    %c0_15 = arith.constant 0 : index
    %22 = vector.load %arg6[%c0_14, %c0_15] : memref<16x128xf32, #tpu.memory_space<vmem>>, vector<16x128xf32>
    tpu.vector_store %arg6[%c0_14, %c0_15], %21 {strides = array<i32>} : memref<16x128xf32, #tpu.memory_space<vmem>>, vector<16x128xf32>,
    return
  }
  func.func @transform_0(%arg0: i32) -> (i32, i32) {
    %c0_i32 = arith.constant 0 : i32
    %c0_i32_0 = arith.constant 0 : i32
    return %c0_i32, %arg0 : i32, i32
  }
  func.func @transform_1(%arg0: i32) -> (i32, i32) {
    %c0_i32 = arith.constant 0 : i32
    %c0_i32_0 = arith.constant 0 : i32
    %c0_i32_1 = arith.constant 0 : i32
    return %c0_i32, %c0_i32_0 : i32, i32
  }
  func.func @transform_2(%arg0: i32) -> (i32, i32) {
    %c0_i32 = arith.constant 0 : i32
    %c0_i32_0 = arith.constant 0 : i32
    %c0_i32_1 = arith.constant 0 : i32
    return %c0_i32, %c0_i32_0 : i32, i32
  }
  func.func @transform_3(%arg0: i32) -> (i32, i32) {
    %c0_i32 = arith.constant 0 : i32
    %c0_i32_0 = arith.constant 0 : i32
    %c0_i32_1 = arith.constant 0 : i32
    return %c0_i32, %c0_i32_0 : i32, i32
  }
  func.func @transform_4(%arg0: i32) -> (i32, i32) {
    %c0_i32 = arith.constant 0 : i32
    %c0_i32_0 = arith.constant 0 : i32
    %c0_i32_1 = arith.constant 0 : i32
    return %c0_i32, %c0_i32_0 : i32, i32
  }
  func.func @transform_5(%arg0: i32) -> (i32, i32) {
    %c0_i32 = arith.constant 0 : i32
    %c0_i32_0 = arith.constant 0 : i32
    return %c0_i32, %arg0 : i32, i32
  }
}

module attributes {stable_mosaic.version = 11 : i64} {
  func.func @_fused_mm_kernel(%arg0: i32, %arg1: memref<16x128xf32, #tpu.memory_space<vmem>>, %arg2: memref<16x16xbf16, #tpu.memory_space<vmem>>, %arg3: memref<16x1xf32, #tpu.memory_space<vmem>>, %arg4: memref<16x128xf32, #tpu.memory_space<vmem>>) attributes {dimension_semantics = [#tpu.dimension_semantics<parallel>], iteration_bounds = array<i64: 1>, scalar_prefetch = 0 : i64, scratch_operands = 0 : i64, tpu.core_type = #tpu.core_type<tc>, window_params = [{transform_indices = @transform_0, window_bounds = array<i64: 16, 128>}, {pipeline_mode = #tpu.pipeline_mode<synchronous>, transform_indices = @transform_1, window_bounds = array<i64: 16, 16>}, {pipeline_mode = #tpu.pipeline_mode<synchronous>, transform_indices = @transform_2, window_bounds = array<i64: 16, 1>}, {transform_indices = @transform_3, window_bounds = array<i64: 16, 128>}]} {
    %c0 = arith.constant 0 : index
    %c0_0 = arith.constant 0 : index
    %0 = vector.load %arg1[%c0, %c0_0] : memref<16x128xf32, #tpu.memory_space<vmem>>, vector<16x128xf32>
    %1 = arith.truncf %0 : vector<16x128xf32> to vector<16x128xbf16>
    %c0_1 = arith.constant 0 : index
    %c0_2 = arith.constant 0 : index
    %2 = vector.load %arg2[%c0_1, %c0_2] : memref<16x16xbf16, #tpu.memory_space<vmem>>, vector<16x16xbf16>
    %c0_3 = arith.constant 0 : index
    %c0_4 = arith.constant 0 : index
    %3 = vector.load %arg3[%c0_3, %c0_4] : memref<16x1xf32, #tpu.memory_space<vmem>>, vector<16x1xf32>
    %cst = arith.constant dense<0.000000e+00> : vector<16x128xf32>
    %4 = tpu.matmul %2, %1, %cst {dimension_numbers = #tpu.dot_dimension_numbers<[1], [0], [0], [1], [0, 0, 1, 1], [], []>} : vector<16x16xbf16>, vector<16x128xbf16>, vector<16x128xf32> -> vector<16x128xf32>
    %5 = vector.broadcast %3 : vector<16x1xf32> to vector<16x128xf32>
    %6 = arith.addf %4, %5 : vector<16x128xf32>
    %cst_5 = arith.constant 0.000000e+00 : f32
    %7 = vector.broadcast %cst_5 : f32 to vector<16x128xf32>
    %8 = arith.cmpf oge, %6, %7 : vector<16x128xf32>
    %cst_6 = arith.constant 2.000000e-01 : f32
    %9 = vector.broadcast %cst_6 : f32 to vector<16x128xf32>
    %10 = arith.mulf %9, %6 : vector<16x128xf32>
    %11 = arith.select %8, %6, %10 : vector<16x128xi1>, vector<16x128xf32>
    %c0_7 = arith.constant 0 : index
    %c0_8 = arith.constant 0 : index
    %12 = vector.load %arg4[%c0_7, %c0_8] : memref<16x128xf32, #tpu.memory_space<vmem>>, vector<16x128xf32>
    tpu.vector_store %arg4[%c0_7, %c0_8], %11 {strides = array<i32>} : memref<16x128xf32, #tpu.memory_space<vmem>>, vector<16x128xf32>,
    return
  }
  func.func @transform_0(%arg0: i32) -> (i32, i32) {
    %c0_i32 = arith.constant 0 : i32
    %c0_i32_0 = arith.constant 0 : i32
    return %c0_i32, %arg0 : i32, i32
  }
  func.func @transform_1(%arg0: i32) -> (i32, i32) {
    %c0_i32 = arith.constant 0 : i32
    %c0_i32_0 = arith.constant 0 : i32
    %c0_i32_1 = arith.constant 0 : i32
    return %c0_i32, %c0_i32_0 : i32, i32
  }
  func.func @transform_2(%arg0: i32) -> (i32, i32) {
    %c0_i32 = arith.constant 0 : i32
    %c0_i32_0 = arith.constant 0 : i32
    %c0_i32_1 = arith.constant 0 : i32
    return %c0_i32, %c0_i32_0 : i32, i32
  }
  func.func @transform_3(%arg0: i32) -> (i32, i32) {
    %c0_i32 = arith.constant 0 : i32
    %c0_i32_0 = arith.constant 0 : i32
    return %c0_i32, %arg0 : i32, i32
  }
}

module attributes {stable_mosaic.version = 11 : i64} {
  func.func @_fused_mm_kernel(%arg0: i32, %arg1: memref<108x128xbf16, #tpu.memory_space<vmem>>, %arg2: memref<16x108xbf16, #tpu.memory_space<vmem>>, %arg3: memref<16x1xf32, #tpu.memory_space<vmem>>, %arg4: memref<16x128xf32, #tpu.memory_space<vmem>>) attributes {dimension_semantics = [#tpu.dimension_semantics<parallel>], iteration_bounds = array<i64: 1>, scalar_prefetch = 0 : i64, scratch_operands = 0 : i64, tpu.core_type = #tpu.core_type<tc>, window_params = [{transform_indices = @transform_0, window_bounds = array<i64: 108, 128>}, {pipeline_mode = #tpu.pipeline_mode<synchronous>, transform_indices = @transform_1, window_bounds = array<i64: 16, 108>}, {pipeline_mode = #tpu.pipeline_mode<synchronous>, transform_indices = @transform_2, window_bounds = array<i64: 16, 1>}, {transform_indices = @transform_3, window_bounds = array<i64: 16, 128>}]} {
    %c0 = arith.constant 0 : index
    %c0_0 = arith.constant 0 : index
    %0 = vector.load %arg1[%c0, %c0_0] : memref<108x128xbf16, #tpu.memory_space<vmem>>, vector<108x128xbf16>
    %c0_1 = arith.constant 0 : index
    %c0_2 = arith.constant 0 : index
    %1 = vector.load %arg2[%c0_1, %c0_2] : memref<16x108xbf16, #tpu.memory_space<vmem>>, vector<16x108xbf16>
    %c0_3 = arith.constant 0 : index
    %c0_4 = arith.constant 0 : index
    %2 = vector.load %arg3[%c0_3, %c0_4] : memref<16x1xf32, #tpu.memory_space<vmem>>, vector<16x1xf32>
    %cst = arith.constant dense<0.000000e+00> : vector<16x128xf32>
    %3 = tpu.matmul %1, %0, %cst {dimension_numbers = #tpu.dot_dimension_numbers<[1], [0], [0], [1], [0, 0, 1, 1], [], []>} : vector<16x108xbf16>, vector<108x128xbf16>, vector<16x128xf32> -> vector<16x128xf32>
    %4 = vector.broadcast %2 : vector<16x1xf32> to vector<16x128xf32>
    %5 = arith.addf %3, %4 : vector<16x128xf32>
    %cst_5 = arith.constant 0.000000e+00 : f32
    %6 = vector.broadcast %cst_5 : f32 to vector<16x128xf32>
    %7 = arith.cmpf oge, %5, %6 : vector<16x128xf32>
    %cst_6 = arith.constant 2.000000e-01 : f32
    %8 = vector.broadcast %cst_6 : f32 to vector<16x128xf32>
    %9 = arith.mulf %8, %5 : vector<16x128xf32>
    %10 = arith.select %7, %5, %9 : vector<16x128xi1>, vector<16x128xf32>
    %c0_7 = arith.constant 0 : index
    %c0_8 = arith.constant 0 : index
    %11 = vector.load %arg4[%c0_7, %c0_8] : memref<16x128xf32, #tpu.memory_space<vmem>>, vector<16x128xf32>
    tpu.vector_store %arg4[%c0_7, %c0_8], %10 {strides = array<i32>} : memref<16x128xf32, #tpu.memory_space<vmem>>, vector<16x128xf32>,
    return
  }
  func.func @transform_0(%arg0: i32) -> (i32, i32) {
    %c0_i32 = arith.constant 0 : i32
    %c0_i32_0 = arith.constant 0 : i32
    return %c0_i32, %arg0 : i32, i32
  }
  func.func @transform_1(%arg0: i32) -> (i32, i32) {
    %c0_i32 = arith.constant 0 : i32
    %c0_i32_0 = arith.constant 0 : i32
    %c0_i32_1 = arith.constant 0 : i32
    return %c0_i32, %c0_i32_0 : i32, i32
  }
  func.func @transform_2(%arg0: i32) -> (i32, i32) {
    %c0_i32 = arith.constant 0 : i32
    %c0_i32_0 = arith.constant 0 : i32
    %c0_i32_1 = arith.constant 0 : i32
    return %c0_i32, %c0_i32_0 : i32, i32
  }
  func.func @transform_3(%arg0: i32) -> (i32, i32) {
    %c0_i32 = arith.constant 0 : i32
    %c0_i32_0 = arith.constant 0 : i32
    return %c0_i32, %arg0 : i32, i32
  }
}

module attributes {stable_mosaic.version = 11 : i64} {
  func.func @_fused_mm_kernel(%arg0: i32, %arg1: memref<108x128xbf16, #tpu.memory_space<vmem>>, %arg2: memref<4x108xbf16, #tpu.memory_space<vmem>>, %arg3: memref<4x1xf32, #tpu.memory_space<vmem>>, %arg4: memref<4x128xf32, #tpu.memory_space<vmem>>) attributes {dimension_semantics = [#tpu.dimension_semantics<parallel>], iteration_bounds = array<i64: 1>, scalar_prefetch = 0 : i64, scratch_operands = 0 : i64, tpu.core_type = #tpu.core_type<tc>, window_params = [{transform_indices = @transform_0, window_bounds = array<i64: 108, 128>}, {pipeline_mode = #tpu.pipeline_mode<synchronous>, transform_indices = @transform_1, window_bounds = array<i64: 4, 108>}, {pipeline_mode = #tpu.pipeline_mode<synchronous>, transform_indices = @transform_2, window_bounds = array<i64: 4, 1>}, {transform_indices = @transform_3, window_bounds = array<i64: 4, 128>}]} {
    %c0 = arith.constant 0 : index
    %c0_0 = arith.constant 0 : index
    %0 = vector.load %arg1[%c0, %c0_0] : memref<108x128xbf16, #tpu.memory_space<vmem>>, vector<108x128xbf16>
    %c0_1 = arith.constant 0 : index
    %c0_2 = arith.constant 0 : index
    %1 = vector.load %arg2[%c0_1, %c0_2] : memref<4x108xbf16, #tpu.memory_space<vmem>>, vector<4x108xbf16>
    %c0_3 = arith.constant 0 : index
    %c0_4 = arith.constant 0 : index
    %2 = vector.load %arg3[%c0_3, %c0_4] : memref<4x1xf32, #tpu.memory_space<vmem>>, vector<4x1xf32>
    %cst = arith.constant dense<0.000000e+00> : vector<4x128xf32>
    %3 = tpu.matmul %1, %0, %cst {dimension_numbers = #tpu.dot_dimension_numbers<[1], [0], [0], [1], [0, 0, 1, 1], [], []>} : vector<4x108xbf16>, vector<108x128xbf16>, vector<4x128xf32> -> vector<4x128xf32>
    %4 = vector.broadcast %2 : vector<4x1xf32> to vector<4x128xf32>
    %5 = arith.addf %3, %4 : vector<4x128xf32>
    %c0_5 = arith.constant 0 : index
    %c0_6 = arith.constant 0 : index
    %6 = vector.load %arg4[%c0_5, %c0_6] : memref<4x128xf32, #tpu.memory_space<vmem>>, vector<4x128xf32>
    tpu.vector_store %arg4[%c0_5, %c0_6], %5 {strides = array<i32>} : memref<4x128xf32, #tpu.memory_space<vmem>>, vector<4x128xf32>,
    return
  }
  func.func @transform_0(%arg0: i32) -> (i32, i32) {
    %c0_i32 = arith.constant 0 : i32
    %c0_i32_0 = arith.constant 0 : i32
    return %c0_i32, %arg0 : i32, i32
  }
  func.func @transform_1(%arg0: i32) -> (i32, i32) {
    %c0_i32 = arith.constant 0 : i32
    %c0_i32_0 = arith.constant 0 : i32
    %c0_i32_1 = arith.constant 0 : i32
    return %c0_i32, %c0_i32_0 : i32, i32
  }
  func.func @transform_2(%arg0: i32) -> (i32, i32) {
    %c0_i32 = arith.constant 0 : i32
    %c0_i32_0 = arith.constant 0 : i32
    %c0_i32_1 = arith.constant 0 : i32
    return %c0_i32, %c0_i32_0 : i32, i32
  }
  func.func @transform_3(%arg0: i32) -> (i32, i32) {
    %c0_i32 = arith.constant 0 : i32
    %c0_i32_0 = arith.constant 0 : i32
    return %c0_i32, %arg0 : i32, i32
  }
}

module attributes {stable_mosaic.version = 11 : i64} {
  func.func @_cca_c5_kernel(%arg0: i32, %arg1: memref<16x128xf32, #tpu.memory_space<vmem>>, %arg2: memref<128x2xf32, #tpu.memory_space<vmem>>, %arg3: memref<2x128xf32, #tpu.memory_space<vmem>>, %arg4: memref<16x1xf32, #tpu.memory_space<vmem>>, %arg5: memref<1x1xf32, #tpu.memory_space<vmem>>, %arg6: memref<16x1xf32, #tpu.memory_space<vmem>>, %arg7: memref<16x1xf32, #tpu.memory_space<vmem>>, %arg8: memref<16x16xf32, #tpu.memory_space<vmem>>, %arg9: memref<16x1xf32, #tpu.memory_space<vmem>>, %arg10: memref<16x128xf32, #tpu.memory_space<vmem>>, %arg11: memref<16x128xf32, #tpu.memory_space<vmem>>) attributes {dimension_semantics = [#tpu.dimension_semantics<arbitrary>], iteration_bounds = array<i64: 1>, scalar_prefetch = 0 : i64, scratch_operands = 0 : i64, tpu.core_type = #tpu.core_type<tc>, window_params = [{pipeline_mode = #tpu.pipeline_mode<synchronous>, transform_indices = @transform_0, window_bounds = array<i64: 16, 128>}, {pipeline_mode = #tpu.pipeline_mode<synchronous>, transform_indices = @transform_1, window_bounds = array<i64: 128, 2>}, {pipeline_mode = #tpu.pipeline_mode<synchronous>, transform_indices = @transform_2, window_bounds = array<i64: 2, 128>}, {pipeline_mode = #tpu.pipeline_mode<synchronous>, transform_indices = @transform_3, window_bounds = array<i64: 16, 1>}, {pipeline_mode = #tpu.pipeline_mode<synchronous>, transform_indices = @transform_4, window_bounds = array<i64: 1, 1>}, {pipeline_mode = #tpu.pipeline_mode<synchronous>, transform_indices = @transform_5, window_bounds = array<i64: 16, 1>}, {pipeline_mode = #tpu.pipeline_mode<synchronous>, transform_indices = @transform_6, window_bounds = array<i64: 16, 1>}, {pipeline_mode = #tpu.pipeline_mode<synchronous>, transform_indices = @transform_7, window_bounds = array<i64: 16, 16>}, {pipeline_mode = #tpu.pipeline_mode<synchronous>, transform_indices = @transform_8, window_bounds = array<i64: 16, 1>}, {pipeline_mode = #tpu.pipeline_mode<synchronous>, transform_indices = @transform_9, window_bounds = array<i64: 16, 128>}, {pipeline_mode = #tpu.pipeline_mode<synchronous>, transform_indices = @transform_10, window_bounds = array<i64: 16, 128>}]} {
    %c0 = arith.constant 0 : index
    %c0_0 = arith.constant 0 : index
    %0 = vector.load %arg1[%c0, %c0_0] : memref<16x128xf32, #tpu.memory_space<vmem>>, vector<16x128xf32>
    %c0_1 = arith.constant 0 : index
    %c0_2 = arith.constant 0 : index
    %1 = vector.load %arg2[%c0_1, %c0_2] : memref<128x2xf32, #tpu.memory_space<vmem>>, vector<128x2xf32>
    %cst = arith.constant dense<0.000000e+00> : vector<16x2xf32>
    %2 = tpu.matmul %0, %1, %cst {dimension_numbers = #tpu.dot_dimension_numbers<[1], [0], [0], [1], [0, 0, 1, 1], [], []>} : vector<16x128xf32>, vector<128x2xf32>, vector<16x2xf32> -> vector<16x2xf32>
    %cst_3 = arith.constant 1.562500e-02 : f32
    %3 = vector.broadcast %cst_3 : f32 to vector<16x2xf32>
    %4 = arith.mulf %2, %3 : vector<16x2xf32>
    %5 = arith.mulf %0, %0 : vector<16x128xf32>
    %cst_4 = arith.constant dense<0.000000e+00> : vector<16x2xf32>
    %6 = tpu.matmul %5, %1, %cst_4 {dimension_numbers = #tpu.dot_dimension_numbers<[1], [0], [0], [1], [0, 0, 1, 1], [], []>} : vector<16x128xf32>, vector<128x2xf32>, vector<16x2xf32> -> vector<16x2xf32>
    %cst_5 = arith.constant 1.562500e-02 : f32
    %7 = vector.broadcast %cst_5 : f32 to vector<16x2xf32>
    %8 = arith.mulf %6, %7 : vector<16x2xf32>
    %9 = arith.mulf %4, %4 : vector<16x2xf32>
    %10 = arith.subf %8, %9 : vector<16x2xf32>
    %cst_6 = arith.constant 0.000000e+00 : f32
    %11 = vector.broadcast %cst_6 : f32 to vector<16x2xf32>
    %12 = arith.maximumf %10, %11 : vector<16x2xf32>
    %13 = math.sqrt %12 : vector<16x2xf32>
    %14 = arith.addf %13, %4 : vector<16x2xf32>
    %c0_7 = arith.constant 0 : index
    %c0_8 = arith.constant 0 : index
    %15 = vector.load %arg4[%c0_7, %c0_8] : memref<16x1xf32, #tpu.memory_space<vmem>>, vector<16x1xf32>
    %16 = vector.broadcast %15 : vector<16x1xf32> to vector<16x2xf32>
    %17 = arith.mulf %16, %14 : vector<16x2xf32>
    %cst_9 = arith.constant dense<0.000000e+00> : vector<2xf32>
    %18 = vector.multi_reduction <add>, %17, %cst_9 [0] : vector<16x2xf32> to vector<2xf32>
    %19 = vector.shape_cast %18 : vector<2xf32> to vector<1x2xf32>
    %c0_10 = arith.constant 0 : index
    %c0_11 = arith.constant 0 : index
    %20 = vector.load %arg5[%c0_10, %c0_11] : memref<1x1xf32, #tpu.memory_space<vmem>>, vector<1x1xf32>
    %21 = vector.broadcast %20 : vector<1x1xf32> to vector<1x2xf32>
    %22 = arith.addf %19, %21 : vector<1x2xf32>
    %cst_12 = arith.constant 0.000000e+00 : f32
    %23 = vector.broadcast %cst_12 : f32 to vector<1x2xf32>
    %24 = arith.maximumf %22, %23 : vector<1x2xf32>
    %c0_13 = arith.constant 0 : index
    %c0_14 = arith.constant 0 : index
    %25 = vector.load %arg6[%c0_13, %c0_14] : memref<16x1xf32, #tpu.memory_space<vmem>>, vector<16x1xf32>
    %26 = vector.broadcast %25 : vector<16x1xf32> to vector<16x2xf32>
    %27 = vector.broadcast %24 : vector<1x2xf32> to vector<16x2xf32>
    %28 = arith.mulf %26, %27 : vector<16x2xf32>
    %c0_15 = arith.constant 0 : index
    %c0_16 = arith.constant 0 : index
    %29 = vector.load %arg7[%c0_15, %c0_16] : memref<16x1xf32, #tpu.memory_space<vmem>>, vector<16x1xf32>
    %30 = vector.broadcast %29 : vector<16x1xf32> to vector<16x2xf32>
    %31 = arith.addf %28, %30 : vector<16x2xf32>
    %32 = arith.negf %31 : vector<16x2xf32>
    %33 = math.exp %32 : vector<16x2xf32>
    %cst_17 = arith.constant 1.000000e+00 : f32
    %34 = vector.broadcast %cst_17 : f32 to vector<16x2xf32>
    %35 = arith.addf %34, %33 : vector<16x2xf32>
    %36 = arith.divf %34, %35 : vector<16x2xf32>
    %c0_18 = arith.constant 0 : index
    %c0_19 = arith.constant 0 : index
    %37 = vector.load %arg3[%c0_18, %c0_19] : memref<2x128xf32, #tpu.memory_space<vmem>>, vector<2x128xf32>
    %cst_20 = arith.constant dense<0.000000e+00> : vector<16x128xf32>
    %38 = tpu.matmul %36, %37, %cst_20 {dimension_numbers = #tpu.dot_dimension_numbers<[1], [0], [0], [1], [0, 0, 1, 1], [], []>} : vector<16x2xf32>, vector<2x128xf32>, vector<16x128xf32> -> vector<16x128xf32>
    %39 = arith.mulf %0, %38 : vector<16x128xf32>
    %40 = arith.truncf %39 : vector<16x128xf32> to vector<16x128xbf16>
    %c0_21 = arith.constant 0 : index
    %c0_22 = arith.constant 0 : index
    %41 = vector.load %arg8[%c0_21, %c0_22] : memref<16x16xf32, #tpu.memory_space<vmem>>, vector<16x16xf32>
    %42 = arith.truncf %41 : vector<16x16xf32> to vector<16x16xbf16>
    %cst_23 = arith.constant dense<0.000000e+00> : vector<16x128xf32>
    %43 = tpu.matmul %42, %40, %cst_23 {dimension_numbers = #tpu.dot_dimension_numbers<[1], [0], [0], [1], [0, 0, 1, 1], [], []>} : vector<16x16xbf16>, vector<16x128xbf16>, vector<16x128xf32> -> vector<16x128xf32>
    %c0_24 = arith.constant 0 : index
    %c0_25 = arith.constant 0 : index
    %44 = vector.load %arg9[%c0_24, %c0_25] : memref<16x1xf32, #tpu.memory_space<vmem>>, vector<16x1xf32>
    %45 = vector.broadcast %44 : vector<16x1xf32> to vector<16x128xf32>
    %46 = arith.addf %43, %45 : vector<16x128xf32>
    %c0_26 = arith.constant 0 : index
    %c0_27 = arith.constant 0 : index
    %47 = vector.load %arg10[%c0_26, %c0_27] : memref<16x128xf32, #tpu.memory_space<vmem>>, vector<16x128xf32>
    %48 = arith.addf %46, %47 : vector<16x128xf32>
    %c0_28 = arith.constant 0 : index
    %c0_29 = arith.constant 0 : index
    %49 = vector.load %arg11[%c0_28, %c0_29] : memref<16x128xf32, #tpu.memory_space<vmem>>, vector<16x128xf32>
    tpu.vector_store %arg11[%c0_28, %c0_29], %48 {strides = array<i32>} : memref<16x128xf32, #tpu.memory_space<vmem>>, vector<16x128xf32>,
    return
  }
  func.func @transform_0(%arg0: i32) -> (i32, i32) {
    %c0_i32 = arith.constant 0 : i32
    %c0_i32_0 = arith.constant 0 : i32
    %c0_i32_1 = arith.constant 0 : i32
    return %c0_i32, %c0_i32_0 : i32, i32
  }
  func.func @transform_1(%arg0: i32) -> (i32, i32) {
    %c0_i32 = arith.constant 0 : i32
    %c0_i32_0 = arith.constant 0 : i32
    %c0_i32_1 = arith.constant 0 : i32
    return %c0_i32, %c0_i32_0 : i32, i32
  }
  func.func @transform_2(%arg0: i32) -> (i32, i32) {
    %c0_i32 = arith.constant 0 : i32
    %c0_i32_0 = arith.constant 0 : i32
    %c0_i32_1 = arith.constant 0 : i32
    return %c0_i32, %c0_i32_0 : i32, i32
  }
  func.func @transform_3(%arg0: i32) -> (i32, i32) {
    %c0_i32 = arith.constant 0 : i32
    %c0_i32_0 = arith.constant 0 : i32
    %c0_i32_1 = arith.constant 0 : i32
    return %c0_i32, %c0_i32_0 : i32, i32
  }
  func.func @transform_4(%arg0: i32) -> (i32, i32) {
    %c0_i32 = arith.constant 0 : i32
    %c0_i32_0 = arith.constant 0 : i32
    %c0_i32_1 = arith.constant 0 : i32
    return %c0_i32, %c0_i32_0 : i32, i32
  }
  func.func @transform_5(%arg0: i32) -> (i32, i32) {
    %c0_i32 = arith.constant 0 : i32
    %c0_i32_0 = arith.constant 0 : i32
    %c0_i32_1 = arith.constant 0 : i32
    return %c0_i32, %c0_i32_0 : i32, i32
  }
  func.func @transform_6(%arg0: i32) -> (i32, i32) {
    %c0_i32 = arith.constant 0 : i32
    %c0_i32_0 = arith.constant 0 : i32
    %c0_i32_1 = arith.constant 0 : i32
    return %c0_i32, %c0_i32_0 : i32, i32
  }
  func.func @transform_7(%arg0: i32) -> (i32, i32) {
    %c0_i32 = arith.constant 0 : i32
    %c0_i32_0 = arith.constant 0 : i32
    %c0_i32_1 = arith.constant 0 : i32
    return %c0_i32, %c0_i32_0 : i32, i32
  }
  func.func @transform_8(%arg0: i32) -> (i32, i32) {
    %c0_i32 = arith.constant 0 : i32
    %c0_i32_0 = arith.constant 0 : i32
    %c0_i32_1 = arith.constant 0 : i32
    return %c0_i32, %c0_i32_0 : i32, i32
  }
  func.func @transform_9(%arg0: i32) -> (i32, i32) {
    %c0_i32 = arith.constant 0 : i32
    %c0_i32_0 = arith.constant 0 : i32
    %c0_i32_1 = arith.constant 0 : i32
    return %c0_i32, %c0_i32_0 : i32, i32
  }
  func.func @transform_10(%arg0: i32) -> (i32, i32) {
    %c0_i32 = arith.constant 0 : i32
    %c0_i32_0 = arith.constant 0 : i32
    %c0_i32_1 = arith.constant 0 : i32
    return %c0_i32, %c0_i32_0 : i32, i32
  }
}

module attributes {stable_mosaic.version = 11 : i64} {
  func.func @_fused_mm_kernel(%arg0: i32, %arg1: memref<144x128xbf16, #tpu.memory_space<vmem>>, %arg2: memref<64x144xbf16, #tpu.memory_space<vmem>>, %arg3: memref<64x1xf32, #tpu.memory_space<vmem>>, %arg4: memref<64x128xf32, #tpu.memory_space<vmem>>) attributes {dimension_semantics = [#tpu.dimension_semantics<parallel>], iteration_bounds = array<i64: 1>, scalar_prefetch = 0 : i64, scratch_operands = 0 : i64, tpu.core_type = #tpu.core_type<tc>, window_params = [{transform_indices = @transform_0, window_bounds = array<i64: 144, 128>}, {pipeline_mode = #tpu.pipeline_mode<synchronous>, transform_indices = @transform_1, window_bounds = array<i64: 64, 144>}, {pipeline_mode = #tpu.pipeline_mode<synchronous>, transform_indices = @transform_2, window_bounds = array<i64: 64, 1>}, {transform_indices = @transform_3, window_bounds = array<i64: 64, 128>}]} {
    %c0 = arith.constant 0 : index
    %c0_0 = arith.constant 0 : index
    %0 = vector.load %arg1[%c0, %c0_0] : memref<144x128xbf16, #tpu.memory_space<vmem>>, vector<144x128xbf16>
    %c0_1 = arith.constant 0 : index
    %c0_2 = arith.constant 0 : index
    %1 = vector.load %arg2[%c0_1, %c0_2] : memref<64x144xbf16, #tpu.memory_space<vmem>>, vector<64x144xbf16>
    %c0_3 = arith.constant 0 : index
    %c0_4 = arith.constant 0 : index
    %2 = vector.load %arg3[%c0_3, %c0_4] : memref<64x1xf32, #tpu.memory_space<vmem>>, vector<64x1xf32>
    %cst = arith.constant dense<0.000000e+00> : vector<64x128xf32>
    %3 = tpu.matmul %1, %0, %cst {dimension_numbers = #tpu.dot_dimension_numbers<[1], [0], [0], [1], [0, 0, 1, 1], [], []>} : vector<64x144xbf16>, vector<144x128xbf16>, vector<64x128xf32> -> vector<64x128xf32>
    %4 = vector.broadcast %2 : vector<64x1xf32> to vector<64x128xf32>
    %5 = arith.addf %3, %4 : vector<64x128xf32>
    %cst_5 = arith.constant 0.000000e+00 : f32
    %6 = vector.broadcast %cst_5 : f32 to vector<64x128xf32>
    %7 = arith.cmpf oge, %5, %6 : vector<64x128xf32>
    %cst_6 = arith.constant 2.000000e-01 : f32
    %8 = vector.broadcast %cst_6 : f32 to vector<64x128xf32>
    %9 = arith.mulf %8, %5 : vector<64x128xf32>
    %10 = arith.select %7, %5, %9 : vector<64x128xi1>, vector<64x128xf32>
    %c0_7 = arith.constant 0 : index
    %c0_8 = arith.constant 0 : index
    %11 = vector.load %arg4[%c0_7, %c0_8] : memref<64x128xf32, #tpu.memory_space<vmem>>, vector<64x128xf32>
    tpu.vector_store %arg4[%c0_7, %c0_8], %10 {strides = array<i32>} : memref<64x128xf32, #tpu.memory_space<vmem>>, vector<64x128xf32>,
    return
  }
  func.func @transform_0(%arg0: i32) -> (i32, i32) {
    %c0_i32 = arith.constant 0 : i32
    %c0_i32_0 = arith.constant 0 : i32
    return %c0_i32, %arg0 : i32, i32
  }
  func.func @transform_1(%arg0: i32) -> (i32, i32) {
    %c0_i32 = arith.constant 0 : i32
    %c0_i32_0 = arith.constant 0 : i32
    %c0_i32_1 = arith.constant 0 : i32
    return %c0_i32, %c0_i32_0 : i32, i32
  }
  func.func @transform_2(%arg0: i32) -> (i32, i32) {
    %c0_i32 = arith.constant 0 : i32
    %c0_i32_0 = arith.constant 0 : i32
    %c0_i32_1 = arith.constant 0 : i32
    return %c0_i32, %c0_i32_0 : i32, i32
  }
  func.func @transform_3(%arg0: i32) -> (i32, i32) {
    %c0_i32 = arith.constant 0 : i32
    %c0_i32_0 = arith.constant 0 : i32
    return %c0_i32, %arg0 : i32, i32
  }
}

module attributes {stable_mosaic.version = 11 : i64} {
  func.func @_fused_mm_kernel(%arg0: i32, %arg1: memref<144x256xbf16, #tpu.memory_space<vmem>>, %arg2: memref<3x144xbf16, #tpu.memory_space<vmem>>, %arg3: memref<3x1xf32, #tpu.memory_space<vmem>>, %arg4: memref<3x256xf32, #tpu.memory_space<vmem>>, %arg5: memref<3x256xf32, #tpu.memory_space<vmem>>) attributes {dimension_semantics = [#tpu.dimension_semantics<parallel>], iteration_bounds = array<i64: 2>, scalar_prefetch = 0 : i64, scratch_operands = 0 : i64, tpu.core_type = #tpu.core_type<tc>, window_params = [{transform_indices = @transform_0, window_bounds = array<i64: 144, 256>}, {pipeline_mode = #tpu.pipeline_mode<synchronous>, transform_indices = @transform_1, window_bounds = array<i64: 3, 144>}, {pipeline_mode = #tpu.pipeline_mode<synchronous>, transform_indices = @transform_2, window_bounds = array<i64: 3, 1>}, {transform_indices = @transform_3, window_bounds = array<i64: 3, 256>}, {transform_indices = @transform_4, window_bounds = array<i64: 3, 256>}]} {
    %c0 = arith.constant 0 : index
    %c0_0 = arith.constant 0 : index
    %0 = vector.load %arg1[%c0, %c0_0] : memref<144x256xbf16, #tpu.memory_space<vmem>>, vector<144x256xbf16>
    %c0_1 = arith.constant 0 : index
    %c0_2 = arith.constant 0 : index
    %1 = vector.load %arg2[%c0_1, %c0_2] : memref<3x144xbf16, #tpu.memory_space<vmem>>, vector<3x144xbf16>
    %c0_3 = arith.constant 0 : index
    %c0_4 = arith.constant 0 : index
    %2 = vector.load %arg3[%c0_3, %c0_4] : memref<3x1xf32, #tpu.memory_space<vmem>>, vector<3x1xf32>
    %cst = arith.constant dense<0.000000e+00> : vector<3x256xf32>
    %3 = tpu.matmul %1, %0, %cst {dimension_numbers = #tpu.dot_dimension_numbers<[1], [0], [0], [1], [0, 0, 1, 1], [], []>} : vector<3x144xbf16>, vector<144x256xbf16>, vector<3x256xf32> -> vector<3x256xf32>
    %4 = vector.broadcast %2 : vector<3x1xf32> to vector<3x256xf32>
    %5 = arith.addf %3, %4 : vector<3x256xf32>
    %c0_5 = arith.constant 0 : index
    %c0_6 = arith.constant 0 : index
    %6 = vector.load %arg4[%c0_5, %c0_6] : memref<3x256xf32, #tpu.memory_space<vmem>>, vector<3x256xf32>
    %7 = arith.addf %5, %6 : vector<3x256xf32>
    %c0_7 = arith.constant 0 : index
    %c0_8 = arith.constant 0 : index
    %8 = vector.load %arg5[%c0_7, %c0_8] : memref<3x256xf32, #tpu.memory_space<vmem>>, vector<3x256xf32>
    tpu.vector_store %arg5[%c0_7, %c0_8], %7 {strides = array<i32>} : memref<3x256xf32, #tpu.memory_space<vmem>>, vector<3x256xf32>,
    return
  }
  func.func @transform_0(%arg0: i32) -> (i32, i32) {
    %c0_i32 = arith.constant 0 : i32
    %c0_i32_0 = arith.constant 0 : i32
    return %c0_i32, %arg0 : i32, i32
  }
  func.func @transform_1(%arg0: i32) -> (i32, i32) {
    %c0_i32 = arith.constant 0 : i32
    %c0_i32_0 = arith.constant 0 : i32
    %c0_i32_1 = arith.constant 0 : i32
    return %c0_i32, %c0_i32_0 : i32, i32
  }
  func.func @transform_2(%arg0: i32) -> (i32, i32) {
    %c0_i32 = arith.constant 0 : i32
    %c0_i32_0 = arith.constant 0 : i32
    %c0_i32_1 = arith.constant 0 : i32
    return %c0_i32, %c0_i32_0 : i32, i32
  }
  func.func @transform_3(%arg0: i32) -> (i32, i32) {
    %c0_i32 = arith.constant 0 : i32
    %c0_i32_0 = arith.constant 0 : i32
    return %c0_i32, %arg0 : i32, i32
  }
  func.func @transform_4(%arg0: i32) -> (i32, i32) {
    %c0_i32 = arith.constant 0 : i32
    %c0_i32_0 = arith.constant 0 : i32
    return %c0_i32, %arg0 : i32, i32
  }
}

</mosaic_0001>

<bundles_post_ra>
// kernel: caon_forward.28
= control target key start
LH: loop header
LB: loop body
LE: loop exit
PB: predicated region body
PF: predicated region fallthrough
CT: control target
= control target key end

     0   :  { %v115_v0 = vmov 0.0   ;;  %vm116_vm0 = vmmov 0   ;;  %v117_v6 = vmov 0   ;;  %vm40_vm1 = vcmask 261120   ;;  %s165_s0 = inlined_call_operand.vmem [shape: f32[32,128], index: 0, kind: input, shape index: {}]   ;;  %s166_s2 = inlined_call_operand.vmem [shape: f32[16,1], index: 2, kind: input, shape index: {}]   ;;  %s167_s1 = inlined_call_operand.vmem [shape: bf16[16,32], index: 1, kind: input, shape index: {}]   ;;  %s168_s3 = inlined_call_operand.vmem [shape: f32[16,128], index: 3, kind: output, shape index: {}]  }
   0x1   :  { %102 = vmatprep.subr.bf16.mxu0 %v115_v0  ;;  %v15_v1 = vld [vmem:[%s165_s0] sm:$0xff]  ;;  %v16_v2 = vld [vmem:[%s165_s0 + $0x8] sm:$0xff]  ;;  %v17_v3 = vld [vmem:[%s165_s0 + $0x10] sm:$0xff]  ;;  %106 = vmatprep.mubr.msk.bf16.mxu0 %vm116_vm0, %v115_v0 }
   0x2   :  { %v19_v4 = vpack.c.bf16 %v16_v2, %v15_v1  ;;  %v18_v5 = vld [vmem:[%s165_s0 + $0x18] sm:$0xff]  ;;  %113 = vset.pattern.permute.xlu0 %v117_v6  ;;  %v23_v7 = vld [vmem:[%s166_s2] sm:$0xff]  ;;  %v24_v9 = vld [vmem:[%s166_s2 + $0x8] sm:$0xff] }
   0x3   :  { %v20_v8 = vpack.c.bf16 %v18_v5, %v17_v3  ;;  %27 = vperm.xlu0 %113, %v23_v7   ;;  %v114_v10 = vld [vmem:[%s167_s1] sm:$0xff]  }
   0x4   :  { %103 = vmatpush3.bf16.msra.mxu0 %v19_v4 }
   0x5   :  { %104 = vmatprep.subr.bf16.mxu0 %v115_v0 }
   0x7   :  { %32 = vperm.xlu0 %113, %v24_v9  }
   0x8   :  { %105 = vmatpush3.bf16.msra.mxu0 %v20_v8 }
   0xb   :  { %107 = vmatmul.mubr.msk.bf16.vlgmr.msra.gmra.mrb[0].mxu0 %vm40_vm1, %v114_v10 }
  0x82   :  { %v28_v11 = vpop.permute.xlu0 %27 }
  0x86   :  { %v33_v15 = vpop.permute.xlu0 %32 }
  0xde   :  { %v78_v12 = vpop.f32.mrb[0].mxu0 }
  0xdf   :  { %v79_v13 = vadd.f32 %v78_v12, %v28_v11  ;;  %v108_v14 = vpop.f32.mrb[1].mxu0 }
  0xe0   :  { %v81_v16 = vpop.f32.mrb[2].mxu0 }
  0xe1   :  { %vm85_vm2 = vcmp.ge.f32.partialorder %v79_v13, 0.0  ;;  %v87_v17 = vmul.f32 0.2, %v79_v13  ;;  %v82_v18 = vadd.f32 %v81_v16, %v33_v15  ;;  %v109_v19 = vpop.f32.mrb[3].mxu0 }
  0xe3   :  { %v89_v20 = vsel %vm85_vm2, %v79_v13, %v87_v17  ;;  %vm86_vm3 = vcmp.ge.f32.partialorder %v82_v18, 0.0  ;;  %v88_v21 = vmul.f32 0.2, %v82_v18 }
  0xe4   :  { %91 = vst [vmem:[%s168_s3] sm:$0xff] %v89_v20 }
  0xe5   :  { %v90_v22 = vsel %vm86_vm3, %v82_v18, %v88_v21 }
  0xe6   :  { %92 = vst [vmem:[%s168_s3 + $0x8] sm:$0xff] %v90_v22 }

// kernel: caon_forward.27
= control target key start
LH: loop header
LB: loop body
LE: loop exit
PB: predicated region body
PF: predicated region fallthrough
CT: control target
= control target key end

     0   :  { %vm125_vm0 = vcmask 1044480   ;;  %vm126_vm1 = vcmask 1045504   ;;  %vm112_vm2 = vcmask 220160   ;;  %v361_v1 = vmov 65535   ;;  %s456_s0 = inlined_call_operand.vmem [shape: bf16[27,128], index: 0, kind: input, shape index: {}]   ;;  %s457_s1 = inlined_call_operand.vmem [shape: bf16[64,27], index: 1, kind: input, shape index: {}]   ;;  %s458_s2 = inlined_call_operand.vmem [shape: f32[64,1], index: 2, kind: input, shape index: {}]   ;;  %s459_s4 = inlined_call_operand.vmem [shape: f32[16,1], index: 4, kind: input, shape index: {}]   ;;  %s460_s3 = inlined_call_operand.vmem [shape: bf16[16,64], index: 3, kind: input, shape index: {}]   ;;  %s461_s5 = inlined_call_operand.vmem [shape: f32[16,128], index: 5, kind: output, shape index: {}]  }
   0x1   :  { %v354_v0 = vld [vmem:[%s456_s0] sm:$0xff]   ;;  %v127_v2 = vsel %vm125_vm0, 4294967295, %v361_v1  ;;  %v355_v3 = vld [vmem:[%s456_s0 + $0x8] sm:$0x3f]   ;;  %v362_v7 = vmov 0   ;;  %v35_v10 = vld [vmem:[%s458_s2 + $0x10] sm:$0xff] }
   0x2   :  { %324 = vmatprep.subr.bf16.mxu0 %v354_v0  ;;  %v128_v4 = vsel %vm126_vm1, %v127_v2, 0  ;;  %v356_v5 = vld [vmem:[%s457_s1] sm:$0xff]   ;;  %352 = vset.pattern.permute.xlu0 %v362_v7  ;;  %v357_v8 = vld [vmem:[%s457_s1 + $0x8] sm:$0xff]   ;;  %v358_v11 = vld [vmem:[%s457_s1 + $0x10] sm:$0xff]   ;;  %v363_v21 = vmov 0.0   ;;  %vm364_vm3 = vmmov 0  }
   0x3   :  { %325 = vmatpush3.bf16.msra.mxu0 %v354_v0  ;;  %v130_v6 = vand.u32 %v355_v3, %v128_v4  ;;  %328 = vmatprep.mubr.msk.bf16.mxu0 %vm112_vm2, %v356_v5  ;;  %v33_v9 = vld [vmem:[%s458_s2] sm:$0xff]  ;;  %v34_v12 = vld [vmem:[%s458_s2 + $0x8] sm:$0xff]  ;;  %v36_v13 = vld [vmem:[%s458_s2 + $0x18] sm:$0xff]  ;;  %vm244_vm12 = vcmask 523264  }
   0x4   :  { %353 = vset.pattern.permute.xlu1 %v362_v7  ;;  %43 = vperm.xlu0 %352, %v33_v9   ;;  %v37_v14 = vld [vmem:[%s458_s2 + $0x20] sm:$0xff]  ;;  %v38_v15 = vld [vmem:[%s458_s2 + $0x28] sm:$0xff]  ;;  %v359_v16 = vld [vmem:[%s457_s1 + $0x18] sm:$0xff]  }
   0x5   :  { %326 = vmatprep.subr.bf16.mxu0 %v130_v6  ;;  %53 = vperm.xlu1 %353, %v35_v10   ;;  %v39_v17 = vld [vmem:[%s458_s2 + $0x30] sm:$0xff]  ;;  %v40_v18 = vld [vmem:[%s458_s2 + $0x38] sm:$0xff]  ;;  %v227_v19 = vld [vmem:[%s459_s4] sm:$0xff] }
   0x6   :  { %v228_v20 = vld [vmem:[%s459_s4 + $0x8] sm:$0xff]  ;;  %336 = vmatprep.subr.bf16.mxu1 %v363_v21  ;;  %344 = vmatprep.mubr.msk.bf16.mxu1 %vm364_vm3, %v363_v21  ;;  %v360_v2 = vld [vmem:[%s460_s3] sm:$0xff]  }
   0x7   :  { %327 = vmatpush3.bf16.msra.mxu0 %v130_v6 }
   0x8   :  { %48 = vperm.xlu0 %352, %v34_v12  }
   0x9   :  { %58 = vperm.xlu1 %353, %v36_v13  }
   0xa   :  { %329 = vmatmul.mubr.msk.bf16.vlgmr.msra.gmra.mrb[0].mxu0 %vm112_vm2, %v357_v8 }
   0xb   :  { %332 = vmatprep.mubr.msk.bf16.mxu0 %vm112_vm2, %v358_v11 }
   0xc   :  { %63 = vperm.xlu0 %352, %v37_v14  }
   0xd   :  { %68 = vperm.xlu1 %353, %v38_v15  }
  0x10   :  { %73 = vperm.xlu0 %352, %v39_v17  }
  0x11   :  { %78 = vperm.xlu1 %353, %v40_v18  }
  0x12   :  { %333 = vmatmul.mubr.msk.bf16.gmra.mrb[4].mxu0 %vm112_vm2, %v359_v16 }
  0x14   :  { %231 = vperm.xlu0 %352, %v227_v19  }
  0x15   :  { %236 = vperm.xlu1 %353, %v228_v20  }
  0x83   :  { %v44_v22 = vpop.permute.xlu0 %43 }
  0x84   :  { %v54_v23 = vpop.permute.xlu1 %53 }
  0x87   :  { %v49_v24 = vpop.permute.xlu0 %48 }
  0x88   :  { %v59_v25 = vpop.permute.xlu1 %58 }
  0x8b   :  { %v64_v29 = vpop.permute.xlu0 %63 }
  0x8c   :  { %v69_v35 = vpop.permute.xlu1 %68 }
  0x8f   :  { %v74_v42 = vpop.permute.xlu0 %73 }
  0x90   :  { %v79_v50 = vpop.permute.xlu1 %78 }
  0x93   :  { %v232_v3 = vpop.permute.xlu0 %231 }
  0x94   :  { %v237_v7 = vpop.permute.xlu1 %236 }
  0xdd   :  { %v330_v26 = vpop.f32.mrb[0].mxu0 }
  0xde   :  { %v175_v27 = vadd.f32 %v330_v26, %v54_v23  ;;  %v166_v28 = vpop.f32.mrb[1].mxu0 }
  0xdf   :  { %v167_v30 = vadd.f32 %v166_v28, %v44_v22  ;;  %v331_v31 = vpop.f32.mrb[2].mxu0 }
  0xe0   :  { %v207_v32 = vmul.f32 0.2, %v175_v27  ;;  %v178_v33 = vadd.f32 %v331_v31, %v59_v25  ;;  %v169_v34 = vpop.f32.mrb[3].mxu0  ;;  %vm199_vm4 = vcmp.ge.f32.partialorder %v175_v27, 0.0 }
  0xe1   :  { %v205_v36 = vmul.f32 0.2, %v167_v30  ;;  %v170_v37 = vadd.f32 %v169_v34, %v49_v24  ;;  %vm197_vm6 = vcmp.ge.f32.partialorder %v167_v30, 0.0 }
  0xe2   :  { %vm200_vm5 = vcmp.ge.f32.partialorder %v178_v33, 0.0  ;;  %v208_v38 = vmul.f32 0.2, %v178_v33  ;;  %v215_v40 = vsel %vm199_vm4, %v175_v27, %v207_v32 }
  0xe3   :  { %v206_v39 = vmul.f32 0.2, %v170_v37  ;;  %vm198_vm7 = vcmp.ge.f32.partialorder %v170_v37, 0.0  ;;  %v213_v44 = vsel %vm197_vm6, %v167_v30, %v205_v36 }
  0xe4   :  { %v216_v41 = vsel %vm200_vm5, %v178_v33, %v208_v38 }
  0xe5   :  { %v334_v43 = vpop.f32.mrb[4].mxu0  ;;  %v214_v45 = vsel %vm198_vm7, %v170_v37, %v206_v39  ;;  %v222_v46 = vpack.c.bf16 %v216_v41, %v215_v40 }
  0xe6   :  { %v191_v47 = vadd.f32 %v334_v43, %v74_v42  ;;  %v182_v48 = vpop.f32.mrb[5].mxu0  ;;  %v221_v49 = vpack.c.bf16 %v214_v45, %v213_v44 }
  0xe7   :  { %v183_v51 = vadd.f32 %v182_v48, %v64_v29  ;;  %v335_v52 = vpop.f32.mrb[6].mxu0 }
  0xe8   :  { %v211_v53 = vmul.f32 0.2, %v191_v47  ;;  %v194_v54 = vadd.f32 %v335_v52, %v79_v50  ;;  %v185_v55 = vpop.f32.mrb[7].mxu0  ;;  %337 = vmatpush3.bf16.msra.mxu1 %v221_v49  ;;  %vm203_vm8 = vcmp.ge.f32.partialorder %v191_v47, 0.0 }
  0xe9   :  { %v209_v56 = vmul.f32 0.2, %v183_v51  ;;  %v186_v57 = vadd.f32 %v185_v55, %v69_v35  ;;  %338 = vmatprep.subr.bf16.mxu1 %v363_v21  ;;  %vm201_vm9 = vcmp.ge.f32.partialorder %v183_v51, 0.0 }
  0xea   :  { %vm204_vm10 = vcmp.ge.f32.partialorder %v194_v54, 0.0  ;;  %v212_v58 = vmul.f32 0.2, %v194_v54  ;;  %v219_v60 = vsel %vm203_vm8, %v191_v47, %v211_v53 }
  0xeb   :  { %vm202_vm11 = vcmp.ge.f32.partialorder %v186_v57, 0.0  ;;  %v210_v59 = vmul.f32 0.2, %v186_v57  ;;  %v217_v62 = vsel %vm201_vm9, %v183_v51, %v209_v56 }
  0xec   :  { %339 = vmatpush3.bf16.msra.mxu1 %v222_v46  ;;  %v220_v61 = vsel %vm204_vm10, %v194_v54, %v212_v58 }
  0xed   :  { %340 = vmatprep.subr.bf16.mxu1 %v363_v21  ;;  %v218_v63 = vsel %vm202_vm11, %v186_v57, %v210_v59  ;;  %v224_v0 = vpack.c.bf16 %v220_v61, %v219_v60 }
  0xee   :  { %v223_v1 = vpack.c.bf16 %v218_v63, %v217_v62 }
  0xf0   :  { %341 = vmatpush3.bf16.msra.mxu1 %v223_v1 }
  0xf1   :  { %342 = vmatprep.subr.bf16.mxu1 %v363_v21 }
  0xf4   :  { %343 = vmatpush3.bf16.msra.mxu1 %v224_v0 }
  0xf7   :  { %345 = vmatmul.mubr.msk.bf16.vlgmr.msra.gmra.mrb[0].mxu1 %vm244_vm12, %v360_v2 }
 0x1ca   :  { %v282_v4 = vpop.f32.mrb[0].mxu1 }
 0x1cb   :  { %v283_v5 = vadd.f32 %v282_v4, %v232_v3  ;;  %v346_v6 = vpop.f32.mrb[1].mxu1 }
 0x1cc   :  { %v285_v8 = vpop.f32.mrb[2].mxu1 }
 0x1cd   :  { %vm289_vm13 = vcmp.ge.f32.partialorder %v283_v5, 0.0  ;;  %v291_v9 = vmul.f32 0.2, %v283_v5  ;;  %v286_v10 = vadd.f32 %v285_v8, %v237_v7  ;;  %v347_v11 = vpop.f32.mrb[3].mxu1 }
 0x1cf   :  { %v293_v12 = vsel %vm289_vm13, %v283_v5, %v291_v9  ;;  %vm290_vm14 = vcmp.ge.f32.partialorder %v286_v10, 0.0  ;;  %v292_v13 = vmul.f32 0.2, %v286_v10 }
 0x1d0   :  { %295 = vst [vmem:[%s461_s5] sm:$0xff] %v293_v12 }
 0x1d1   :  { %v294_v14 = vsel %vm290_vm14, %v286_v10, %v292_v13 }
 0x1d2   :  { %296 = vst [vmem:[%s461_s5 + $0x8] sm:$0xff] %v294_v14 }

// kernel: caon_forward.29
= control target key start
LH: loop header
LB: loop body
LE: loop exit
PB: predicated region body
PF: predicated region fallthrough
CT: control target
= control target key end

     0   :  { %v109_v0 = vmov 0.0   ;;  %vm110_vm0 = vmmov 0   ;;  %v111_v4 = vmov 0   ;;  %vm37_vm1 = vcmask 130048   ;;  %s153_s0 = inlined_call_operand.vmem [shape: f32[16,128], index: 0, kind: input, shape index: {}]   ;;  %s154_s1 = inlined_call_operand.vmem [shape: bf16[16,16], index: 1, kind: input, shape index: {}]   ;;  %s155_s2 = inlined_call_operand.vmem [shape: f32[16,1], index: 2, kind: input, shape index: {}]   ;;  %s156_s3 = inlined_call_operand.vmem [shape: f32[16,128], index: 3, kind: output, shape index: {}]  }
   0x1   :  { %98 = vmatprep.subr.bf16.mxu0 %v109_v0  ;;  %v15_v1 = vld [vmem:[%s153_s0] sm:$0xff]  ;;  %v16_v2 = vld [vmem:[%s153_s0 + $0x8] sm:$0xff]  ;;  %100 = vmatprep.mubr.msk.bf16.mxu0 %vm110_vm0, %v109_v0 }
   0x2   :  { %v17_v3 = vpack.c.bf16 %v16_v2, %v15_v1  ;;  %107 = vset.pattern.permute.xlu0 %v111_v4  ;;  %v20_v5 = vld [vmem:[%s155_s2] sm:$0xff]  ;;  %v21_v7 = vld [vmem:[%s155_s2 + $0x8] sm:$0xff] }
   0x3   :  { %v108_v6 = vld [vmem:[%s154_s1] sm:$0xff]   ;;  %24 = vperm.xlu0 %107, %v20_v5  }
   0x4   :  { %99 = vmatpush3.bf16.msra.mxu0 %v17_v3 }
   0x7   :  { %101 = vmatmul.mubr.msk.bf16.vlgmr.msra.gmra.mrb[0].mxu0 %vm37_vm1, %v108_v6  ;;  %29 = vperm.xlu0 %107, %v21_v7  }
  0x82   :  { %v25_v8 = vpop.permute.xlu0 %24 }
  0x86   :  { %v30_v12 = vpop.permute.xlu0 %29 }
  0xda   :  { %v75_v9 = vpop.f32.mrb[0].mxu0 }
  0xdb   :  { %v76_v10 = vadd.f32 %v75_v9, %v25_v8  ;;  %v102_v11 = vpop.f32.mrb[1].mxu0 }
  0xdc   :  { %v78_v13 = vpop.f32.mrb[2].mxu0 }
  0xdd   :  { %vm82_vm2 = vcmp.ge.f32.partialorder %v76_v10, 0.0  ;;  %v84_v14 = vmul.f32 0.2, %v76_v10  ;;  %v79_v15 = vadd.f32 %v78_v13, %v30_v12  ;;  %v103_v16 = vpop.f32.mrb[3].mxu0 }
  0xdf   :  { %v86_v17 = vsel %vm82_vm2, %v76_v10, %v84_v14  ;;  %vm83_vm3 = vcmp.ge.f32.partialorder %v79_v15, 0.0  ;;  %v85_v18 = vmul.f32 0.2, %v79_v15 }
  0xe0   :  { %88 = vst [vmem:[%s156_s3] sm:$0xff] %v86_v17 }
  0xe1   :  { %v87_v19 = vsel %vm83_vm3, %v79_v15, %v85_v18 }
  0xe2   :  { %89 = vst [vmem:[%s156_s3 + $0x8] sm:$0xff] %v87_v19 }

// kernel: caon_forward.30
= control target key start
LH: loop header
LB: loop body
LE: loop exit
PB: predicated region body
PF: predicated region fallthrough
CT: control target
= control target key end

     0   :  { %v197_v0 = vmov 0.0   ;;  %vm198_vm0 = vmmov 0   ;;  %v199_v2 = vmov 0   ;;  %vm93_vm1 = vcmask 1045504   ;;  %s256_s0 = inlined_call_operand.vmem [shape: bf16[108,128], index: 0, kind: input, shape index: {}]   ;;  %s257_s2 = inlined_call_operand.vmem [shape: f32[16,1], index: 2, kind: input, shape index: {}]   ;;  %s258_s1 = inlined_call_operand.vmem [shape: bf16[16,108], index: 1, kind: input, shape index: {}]   ;;  %s259_s3 = inlined_call_operand.vmem [shape: f32[16,128], index: 3, kind: output, shape index: {}]  }
   0x1   :  { %167 = vmatprep.subr.bf16.mxu0 %v197_v0  ;;  %v189_v1 = vld [vmem:[%s256_s0] sm:$0xff]   ;;  %181 = vmatprep.mubr.msk.bf16.mxu0 %vm198_vm0, %v197_v0  ;;  %v190_v3 = vld [vmem:[%s256_s0 + $0x8] sm:$0xff]   ;;  %v191_v4 = vld [vmem:[%s256_s0 + $0x10] sm:$0xff]   ;;  %vm89_vm2 = vcmask 883712  }
   0x2   :  { %188 = vset.pattern.permute.xlu0 %v199_v2  ;;  %168 = vmatpush3.bf16.msra.mxu0 %v189_v1  ;;  %v31_v5 = vld [vmem:[%s257_s2] sm:$0xff]  ;;  %v192_v6 = vld [vmem:[%s256_s0 + $0x18] sm:$0xff]   ;;  %v32_v7 = vld [vmem:[%s257_s2 + $0x8] sm:$0xff] }
   0x3   :  { %169 = vmatprep.subr.bf16.mxu0 %v197_v0  ;;  %35 = vperm.xlu0 %188, %v31_v5   ;;  %v193_v8 = vld [vmem:[%s256_s0 + $0x20] sm:$0xff]   ;;  %v194_v9 = vld [vmem:[%s256_s0 + $0x28] sm:$0xff]   ;;  %v195_v10 = vld [vmem:[%s256_s0 + $0x30] sm:$0x3f]  }
   0x4   :  { %v95_v11 = vsel %vm93_vm1, %v195_v10, 0  ;;  %v196_v12 = vld [vmem:[%s258_s1] sm:$0xff]  }
   0x6   :  { %170 = vmatpush3.bf16.msra.mxu0 %v190_v3 }
   0x7   :  { %171 = vmatprep.subr.bf16.mxu0 %v197_v0  ;;  %40 = vperm.xlu0 %188, %v32_v7  }
   0xa   :  { %172 = vmatpush3.bf16.msra.mxu0 %v191_v4 }
   0xb   :  { %173 = vmatprep.subr.bf16.mxu0 %v197_v0 }
   0xe   :  { %174 = vmatpush3.bf16.msra.mxu0 %v192_v6 }
   0xf   :  { %175 = vmatprep.subr.bf16.mxu0 %v197_v0 }
  0x12   :  { %176 = vmatpush3.bf16.msra.mxu0 %v193_v8 }
  0x13   :  { %177 = vmatprep.subr.bf16.mxu0 %v197_v0 }
  0x16   :  { %178 = vmatpush3.bf16.msra.mxu0 %v194_v9 }
  0x17   :  { %179 = vmatprep.subr.bf16.mxu0 %v197_v0 }
  0x1a   :  { %180 = vmatpush3.bf16.msra.mxu0 %v95_v11 }
  0x1d   :  { %182 = vmatmul.mubr.msk.bf16.vlgmr.msra.gmra.mrb[0].mxu0 %vm89_vm2, %v196_v12 }
  0x82   :  { %v36_v13 = vpop.permute.xlu0 %35 }
  0x86   :  { %v41_v17 = vpop.permute.xlu0 %40 }
  0xf0   :  { %v131_v14 = vpop.f32.mrb[0].mxu0 }
  0xf1   :  { %v132_v15 = vadd.f32 %v131_v14, %v36_v13  ;;  %v183_v16 = vpop.f32.mrb[1].mxu0 }
  0xf2   :  { %v134_v18 = vpop.f32.mrb[2].mxu0 }
  0xf3   :  { %vm138_vm3 = vcmp.ge.f32.partialorder %v132_v15, 0.0  ;;  %v140_v19 = vmul.f32 0.2, %v132_v15  ;;  %v135_v20 = vadd.f32 %v134_v18, %v41_v17  ;;  %v184_v21 = vpop.f32.mrb[3].mxu0 }
  0xf5   :  { %v142_v22 = vsel %vm138_vm3, %v132_v15, %v140_v19  ;;  %vm139_vm4 = vcmp.ge.f32.partialorder %v135_v20, 0.0  ;;  %v141_v23 = vmul.f32 0.2, %v135_v20 }
  0xf6   :  { %144 = vst [vmem:[%s259_s3] sm:$0xff] %v142_v22 }
  0xf7   :  { %v143_v24 = vsel %vm139_vm4, %v135_v20, %v141_v23 }
  0xf8   :  { %145 = vst [vmem:[%s259_s3 + $0x8] sm:$0xff] %v143_v24 }

// kernel: caon_forward.32
= control target key start
LH: loop header
LB: loop body
LE: loop exit
PB: predicated region body
PF: predicated region fallthrough
CT: control target
= control target key end

     0   :  { %v175_v0 = vmov 0.0   ;;  %vm176_vm0 = vmmov 0   ;;  %v177_v2 = vmov 0   ;;  %vm81_vm1 = vcmask 1045504   ;;  %s228_s0 = inlined_call_operand.vmem [shape: bf16[108,128], index: 0, kind: input, shape index: {}]   ;;  %s229_s2 = inlined_call_operand.vmem [shape: f32[4,1], index: 2, kind: input, shape index: {}]   ;;  %s230_s1 = inlined_call_operand.vmem [shape: bf16[4,108], index: 1, kind: input, shape index: {}]   ;;  %s231_s3 = inlined_call_operand.vmem [shape: f32[4,128], index: 3, kind: output, shape index: {}]  }
   0x1   :  { %146 = vmatprep.subr.bf16.mxu0 %v175_v0  ;;  %v168_v1 = vld [vmem:[%s228_s0] sm:$0xff]   ;;  %160 = vmatprep.mubr.msk.bf16.mxu0 %vm176_vm0, %v175_v0  ;;  %v169_v3 = vld [vmem:[%s228_s0 + $0x8] sm:$0xff]   ;;  %v170_v4 = vld [vmem:[%s228_s0 + $0x10] sm:$0xff]   ;;  %vm77_vm2 = vcmask 883712  }
   0x2   :  { %167 = vset.pattern.permute.xlu0 %v177_v2  ;;  %147 = vmatpush3.bf16.msra.mxu0 %v168_v1  ;;  %v30_v5 = vld [vmem:[%s229_s2] sm:$0xf]  ;;  %v171_v6 = vld [vmem:[%s228_s0 + $0x18] sm:$0xff]   ;;  %v173_v8 = vld [vmem:[%s228_s0 + $0x28] sm:$0xff]  }
   0x3   :  { %148 = vmatprep.subr.bf16.mxu0 %v175_v0  ;;  %33 = vperm.xlu0 %167, %v30_v5   ;;  %v172_v7 = vld [vmem:[%s228_s0 + $0x20] sm:$0xff]   ;;  %v174_v9 = vld [vmem:[%s228_s0 + $0x30] sm:$0x3f]  }
   0x4   :  { %v83_v10 = vsel %vm81_vm1, %v174_v9, 0  ;;  %v29_v11 = vld [vmem:[%s230_s1] sm:$0x3] }
   0x6   :  { %149 = vmatpush3.bf16.msra.mxu0 %v169_v3 }
   0x7   :  { %150 = vmatprep.subr.bf16.mxu0 %v175_v0 }
   0xa   :  { %151 = vmatpush3.bf16.msra.mxu0 %v170_v4 }
   0xb   :  { %152 = vmatprep.subr.bf16.mxu0 %v175_v0 }
   0xe   :  { %153 = vmatpush3.bf16.msra.mxu0 %v171_v6 }
   0xf   :  { %154 = vmatprep.subr.bf16.mxu0 %v175_v0 }
  0x12   :  { %155 = vmatpush3.bf16.msra.mxu0 %v172_v7 }
  0x13   :  { %156 = vmatprep.subr.bf16.mxu0 %v175_v0 }
  0x16   :  { %157 = vmatpush3.bf16.msra.mxu0 %v173_v8 }
  0x17   :  { %158 = vmatprep.subr.bf16.mxu0 %v175_v0 }
  0x1a   :  { %159 = vmatpush3.bf16.msra.mxu0 %v83_v10 }
  0x1d   :  { %161 = vmatmul.mubr.msk.bf16.vlgmr.msra.gmra.mrb[0].mxu0 %vm77_vm2, %v29_v11 }
  0x82   :  { %v34_v12 = vpop.permute.xlu0 %33 }
  0xf0   :  { %v119_v13 = vpop.f32.mrb[0].mxu0 }
  0xf1   :  { %v120_v14 = vadd.f32 %v119_v13, %v34_v12  ;;  %v162_v15 = vpop.f32.mrb[1].mxu0 }
  0xf2   :  { %v122_v16 = vpop.f32.mrb[2].mxu0 }
  0xf3   :  { %125 = vst [vmem:[%s231_s3] sm:$0xf] %v120_v14  ;;  %v163_v17 = vpop.f32.mrb[3].mxu0 }

// kernel: caon_forward.33
= control target key start
LH: loop header
LB: loop body
LE: loop exit
PB: predicated region body
PF: predicated region fallthrough
CT: control target
= control target key end

     0   :  { %v678_v3 = vmov 0   ;;  %vm317_vm0 = vcmask 1041408   ;;  %vm248_vm5 = vcmask 15360   ;;  %vm680_vm6 = vmmov 0   ;;  %s854_s1 = inlined_call_operand.vmem [shape: f32[128,2], index: 1, kind: input, shape index: {}]   ;;  %s855_s4 = inlined_call_operand.<no memory space> [shape: f32[1,1], index: 4, kind: input, shape index: {}]   ;;  %s856_s0 = inlined_call_operand.vmem [shape: f32[16,128], index: 0, kind: input, shape index: {}]   ;;  %s857_s3 = inlined_call_operand.vmem [shape: f32[16,1], index: 3, kind: input, shape index: {}]   ;;  %s858_s5 = inlined_call_operand.vmem [shape: f32[16,1], index: 5, kind: input, shape index: {}]   ;;  %s859_s6 = inlined_call_operand.vmem [shape: f32[16,1], index: 6, kind: input, shape index: {}]   ;;  %s860_s8 = inlined_call_operand.vmem [shape: f32[16,1], index: 8, kind: input, shape index: {}]   ;;  %s861_s2 = inlined_call_operand.vmem [shape: f32[2,128], index: 2, kind: input, shape index: {}]   ;;  %s862_s7 = inlined_call_operand.vmem [shape: f32[16,16], index: 7, kind: input, shape index: {}]   ;;  %s863_s9 = inlined_call_operand.vmem [shape: f32[16,128], index: 9, kind: input, shape index: {}]   ;;  %s864_s10 = inlined_call_operand.vmem [shape: f32[16,128], index: 10, kind: output, shape index: {}]  }
   0x1   :  { %v40_v0 = vld [vmem:[%s854_s1] sm:$0xff]  ;;  %v41_v1 = vld [vmem:[%s854_s1 + $0x8] sm:$0xff]  ;;  %v42_v2 = vld [vmem:[%s854_s1 + $0x10] sm:$0xff]  ;;  %664 = vset.pattern.permute.xlu0 %v678_v3  ;;  %665 = vset.pattern.permute.xlu1 %v678_v3  ;;  %v15_v4 = vstv %s855_s4  ;;  %vm414_vm7 = vcmask 130048  }
   0x2   :  { %v597_v5 = vpack.c.bf16 %v41_v1, %v40_v0  ;;  %v43_v6 = vld [vmem:[%s854_s1 + $0x18] sm:$0xff]  ;;  %16 = vst [vmem:[#allocation2] sm:$0x1] %v15_v4  ;;  %v44_v8 = vld [vmem:[%s854_s1 + $0x20] sm:$0xff]  ;;  %v45_v9 = vld [vmem:[%s854_s1 + $0x28] sm:$0xff] }
   0x3   :  { %v601_v7 = vpack.c.bf16 %v43_v6, %v42_v2  ;;  %v605_v10 = vpack.c.bf16 %v45_v9, %v44_v8  ;;  %v760_v11 = vld [vmem:[%s856_s0] sm:$0xff]  ;;  %v46_v12 = vld [vmem:[%s854_s1 + $0x30] sm:$0xff]  ;;  %v47_v13 = vld [vmem:[%s854_s1 + $0x38] sm:$0xff] }
   0x4   :  { %598 = vmatprep.subr.bf16.mxu0 %v597_v5  ;;  %630 = vmatprep.subr.bf16.mxu1 %v597_v5  ;;  %v133_v14 = vmul.f32 %v760_v11, %v760_v11  ;;  %v234_v15 = vld [vmem:[%s857_s3] sm:$0xff]  ;;  %v235_v16 = vld [vmem:[%s857_s3 + $0x8] sm:$0xff]  ;;  %v609_v18 = vpack.c.bf16 %v47_v13, %v46_v12  ;;  %v50_v24 = vld [vmem:[%s854_s1 + $0x50] sm:$0xff] }
   0x5   :  { %600 = vmatpush3.bf16.msra.mxu0 %v597_v5  ;;  %632 = vmatpush3.bf16.msra.mxu1 %v597_v5  ;;  %v48_v19 = vld [vmem:[%s854_s1 + $0x40] sm:$0xff]  ;;  %v49_v20 = vld [vmem:[%s854_s1 + $0x48] sm:$0xff]  ;;  %v51_v25 = vld [vmem:[%s854_s1 + $0x58] sm:$0xff] }
   0x6   :  { %602 = vmatprep.subr.bf16.mxu0 %v601_v7  ;;  %634 = vmatprep.subr.bf16.mxu1 %v601_v7  ;;  %v270_v21 = vld [vmem:[%s858_s5] sm:$0xff]  ;;  %v271_v22 = vld [vmem:[%s858_s5 + $0x8] sm:$0xff]  ;;  %v613_v23 = vpack.c.bf16 %v49_v20, %v48_v19  ;;  %v617_v28 = vpack.c.bf16 %v51_v25, %v50_v24  ;;  %v54_v34 = vld [vmem:[%s854_s1 + $0x70] sm:$0xff] }
   0x7   :  { %548 = vmatprep.mubr.f32.mxu0 %v760_v11  ;;  %238 = vperm.xlu0 %664, %v234_v15   ;;  %v284_v26 = vld [vmem:[%s859_s6] sm:$0xff]  ;;  %v285_v27 = vld [vmem:[%s859_s6 + $0x8] sm:$0xff]  ;;  %v55_v35 = vld [vmem:[%s854_s1 + $0x78] sm:$0xff] }
   0x8   :  { %583 = vmatprep.mubr.f32.mxu1 %v133_v14  ;;  %v52_v29 = vld [vmem:[%s854_s1 + $0x60] sm:$0xff]  ;;  %v53_v30 = vld [vmem:[%s854_s1 + $0x68] sm:$0xff]  ;;  %v625_v36 = vpack.c.bf16 %v55_v35, %v54_v34 }
   0x9   :  { %604 = vmatpush3.bf16.msra.mxu0 %v601_v7  ;;  %636 = vmatpush3.bf16.msra.mxu1 %v601_v7  ;;  %v258_v17 = vld [vmem:[#allocation2] sm:$0x1]  ;;  %v403_v32 = vld [vmem:[%s860_s8 + $0x8] sm:$0xff]  ;;  %v621_v33 = vpack.c.bf16 %v53_v30, %v52_v29  ;;  %v264_v7 = vlaneseq }
   0xa   :  { %606 = vmatprep.subr.bf16.mxu0 %v605_v10  ;;  %638 = vmatprep.subr.bf16.mxu1 %v605_v10  ;;  %v402_v31 = vld [vmem:[%s860_s8] sm:$0xff]  ;;  %v822_v37 = vld [vmem:[%s856_s0 + $0x8] sm:$0xff] }
   0xb   :  { %261 = vperm.xlu1 %665, %v258_v17   ;;  %243 = vperm.xlu0 %664, %v235_v16   ;;  %v134_v38 = vmul.f32 %v822_v37, %v822_v37  ;;  %v310_v39 = vld [vmem:[%s861_s2] sm:$0x3]  ;;  %v265_v12 = vshrl.u32 %v264_v7, 7 }
   0xd   :  { %608 = vmatpush3.bf16.msra.mxu0 %v605_v10  ;;  %640 = vmatpush3.bf16.msra.mxu1 %v605_v10  ;;  %v266_v15 = vsub.s32 0, %v265_v12 }
   0xe   :  { %610 = vmatprep.subr.bf16.mxu0 %v609_v18  ;;  %642 = vmatprep.subr.bf16.mxu1 %v609_v18 }
   0xf   :  { %274 = vperm.xlu1 %665, %v270_v21   ;;  %279 = vperm.xlu0 %664, %v271_v22  }
  0x11   :  { %612 = vmatpush3.bf16.msra.mxu0 %v609_v18  ;;  %644 = vmatpush3.bf16.msra.mxu1 %v609_v18 }
  0x12   :  { %614 = vmatprep.subr.bf16.mxu0 %v613_v23  ;;  %646 = vmatprep.subr.bf16.mxu1 %v613_v23 }
  0x13   :  { %288 = vperm.xlu1 %665, %v284_v26   ;;  %293 = vperm.xlu0 %664, %v285_v27  }
  0x15   :  { %616 = vmatpush3.bf16.msra.mxu0 %v613_v23  ;;  %648 = vmatpush3.bf16.msra.mxu1 %v613_v23 }
  0x16   :  { %618 = vmatprep.subr.bf16.mxu0 %v617_v28  ;;  %650 = vmatprep.subr.bf16.mxu1 %v617_v28 }
  0x17   :  { %406 = vperm.xlu1 %665, %v402_v31   ;;  %411 = vperm.xlu0 %664, %v403_v32  }
  0x19   :  { %620 = vmatpush3.bf16.msra.mxu0 %v617_v28  ;;  %652 = vmatpush3.bf16.msra.mxu1 %v617_v28 }
  0x1a   :  { %622 = vmatprep.subr.bf16.mxu0 %v621_v33  ;;  %654 = vmatprep.subr.bf16.mxu1 %v621_v33 }
  0x1d   :  { %624 = vmatpush3.bf16.msra.mxu0 %v621_v33  ;;  %656 = vmatpush3.bf16.msra.mxu1 %v621_v33 }
  0x1e   :  { %626 = vmatprep.subr.bf16.mxu0 %v625_v36  ;;  %658 = vmatprep.subr.bf16.mxu1 %v625_v36 }
  0x21   :  { %628 = vmatpush3.bf16.msra.mxu0 %v625_v36  ;;  %660 = vmatpush3.bf16.msra.mxu1 %v625_v36 }
  0x22   :  { %586 = vmatprep.subr.msk.mxu0 %vm317_vm0, %v310_v39 }
  0x24   :  { %549 = vmatmul.mubr.f32.vlgmr.msra.gmra.mrb[0].mxu0 %v822_v37  ;;  %584 = vmatmul.mubr.f32.vlgmr.msra.gmra.mrb[0].mxu1 %v134_v38 }
  0x25   :  { %587 = vmatpush3.msk.msra.mxu0 %vm317_vm0, %v310_v39 }
  0x86   :  { %v239_v55 = vpop.permute.xlu0 %238 }
  0x8a   :  { %v244_v3 = vpop.permute.xlu0 %243  ;;  %v262_v16 = vpop.permute.xlu1 %261 }
  0x8b   :  { %v267_v19 = vrot.slane %v262_v16, %v266_v15 }
  0x8e   :  { %v280_v21 = vpop.permute.xlu0 %279  ;;  %v275_v22 = vpop.permute.xlu1 %274 }
  0x92   :  { %v294_v27 = vpop.permute.xlu0 %293  ;;  %v289_v28 = vpop.permute.xlu1 %288 }
  0xf7   :  { %v550_v40 = vpop.f32.mrb[0].mxu0  ;;  %v585_v41 = vpop.f32.mrb[0].mxu1 }
  0xf8   :  { %v132_v42 = vmul.f32 0.015625, %v550_v40  ;;  %v122_v43 = vpop.f32.mrb[1].mxu0  ;;  %v211_v44 = vmul.f32 0.015625, %v585_v41  ;;  %v201_v45 = vpop.f32.mrb[1].mxu1  ;;  %v679_v40 = vmov 0.0  }
  0xf9   :  { %v131_v46 = vmul.f32 0.015625, %v122_v43  ;;  %v210_v47 = vmul.f32 0.015625, %v201_v45  ;;  %591 = vmatprep.subr.bf16.mxu1 %v679_v40  ;;  %593 = vmatprep.mubr.msk.bf16.mxu1 %vm680_vm6, %v679_v40  ;;  %v399_v45 = vld [vmem:[%s862_s7] sm:$0xff] }
  0xfa   :  { %v213_v48 = vmul.f32 %v132_v42, %v132_v42 }
  0xfb   :  { %v212_v49 = vmul.f32 %v131_v46, %v131_v46 }
  0xfc   :  { %v215_v50 = vsub.f32 %v211_v44, %v213_v48 }
  0xfd   :  { %v214_v51 = vsub.f32 %v210_v47, %v212_v49  ;;  %v407_v49 = vpop.permute.xlu1 %406 }
  0xfe   :  { %v217_v52 = vmax.f32 %v215_v50, 0.0 }
  0xff   :  { %v216_v53 = vmax.f32 %v214_v51, 0.0 }
 0x100   :  { %666 = vrsqrt.f32 %v217_v52  ;;  %vm227_vm1 = vcmp.eq.f32.partialorder %v217_v52, inf  ;;  %v230_v59 = vand.u32 2147483648, %v217_v52  ;;  %vm229_vm3 = vcmp.eq.f32.partialorder %v217_v52, 0.0 }
 0x101   :  { %668 = vrsqrt.f32 %v216_v53  ;;  %vm220_vm2 = vcmp.eq.f32.partialorder %v216_v53, inf  ;;  %v223_v60 = vand.u32 2147483648, %v216_v53  ;;  %vm222_vm4 = vcmp.eq.f32.partialorder %v216_v53, 0.0 }
 0x10a   :  { %v667_v54 = vpop.eup %666 }
 0x10b   :  { %v669_v56 = vpop.eup %668  ;;  %v226_v57 = vmul.f32 %v667_v54, %v217_v52  ;;  %v460_v54 = vld [vmem:[%s863_s9 + $0x8] sm:$0xff] }
 0x10c   :  { %v219_v58 = vmul.f32 %v669_v56, %v216_v53 }
 0x10d   :  { %v228_v61 = vsel %vm227_vm1, %v217_v52, %v226_v57  ;;  %v412_v52 = vpop.permute.xlu0 %411 }
 0x10e   :  { %v221_v62 = vsel %vm220_vm2, %v216_v53, %v219_v58  ;;  %v231_v63 = vsel %vm229_vm3, %v230_v59, %v228_v61 }
 0x10f   :  { %v224_v0 = vsel %vm222_vm4, %v223_v60, %v221_v62  ;;  %v233_v1 = vadd.f32 %v231_v63, %v132_v42 }
 0x110   :  { %v232_v2 = vadd.f32 %v224_v0, %v131_v46  ;;  %v400_v46 = vld [vmem:[%s862_s7 + $0x8] sm:$0xff] }
 0x111   :  { %v247_v4 = vmul.f32 %v244_v3, %v233_v1  ;;  %v401_v48 = vpack.c.bf16 %v400_v46, %v399_v45 }
 0x112   :  { %v246_v5 = vmul.f32 %v239_v55, %v232_v2 }
 0x113   :  { %v250_v6 = vsel %vm248_vm5, %v247_v4, 0.0 }
 0x114   :  { %v249_v8 = vsel %vm248_vm5, %v246_v5, 0.0 }
 0x115   :  { %v251_v9 = vadd.f32 %v250_v6, %v249_v8 }
 0x117   :  { %v252_v10 = vrot.slane %v251_v9, 4 }
 0x119   :  { %v253_v13 = vadd.f32 %v252_v10, %v251_v9 }
 0x11b   :  { %v254_v14 = vrot.slane %v253_v13, 2 }
 0x11d   :  { %v255_v17 = vadd.f32 %v254_v14, %v253_v13 }
 0x11f   :  { %v256_v18 = vrot.slane %v255_v17, 1 }
 0x121   :  { %v257_v20 = vadd.f32 %v256_v18, %v255_v17 }
 0x123   :  { %v268_v23 = vadd.f32 %v267_v19, %v257_v20 }
 0x125   :  { %v269_v24 = vmax.f32 %v268_v23, 0.0 }
 0x127   :  { %v282_v25 = vmul.f32 %v275_v22, %v269_v24  ;;  %v283_v26 = vmul.f32 %v280_v21, %v269_v24 }
 0x129   :  { %v297_v29 = vadd.f32 %v294_v27, %v283_v26  ;;  %v296_v30 = vadd.f32 %v289_v28, %v282_v25 }
 0x12b   :  { %v470_v31 = vmul.f32 -1.442695, %v297_v29  ;;  %v469_v32 = vmul.f32 -1.442695, %v296_v30 }
 0x12d   :  { %670 = vpow2.f32 %v470_v31 }
 0x12e   :  { %672 = vpow2.f32 %v469_v32 }
 0x137   :  { %v671_v33 = vpop.eup %670 }
 0x138   :  { %v673_v34 = vpop.eup %672  ;;  %v305_v35 = vadd.f32 1.0, %v671_v33 }
 0x139   :  { %v304_v36 = vadd.f32 1.0, %v673_v34 }
 0x13a   :  { %674 = vrcp.f32 %v305_v35 }
 0x13b   :  { %676 = vrcp.f32 %v304_v36 }
 0x144   :  { %v675_v38 = vpop.eup %674 }
 0x145   :  { %v677_v39 = vpop.eup %676 }
 0x146   :  { %588 = vmatprep.mubr.msk.f32.mxu0 %vm248_vm5, %v677_v39 }
 0x147   :  { %589 = vmatmul.mubr.msk.f32.vlgmr.msra.gmra.mrb[2].mxu0 %vm248_vm5, %v675_v38 }
 0x21a   :  { %v590_v41 = vpop.f32.mrb[2].mxu0 }
 0x21b   :  { %v397_v42 = vmul.f32 %v590_v41, %v822_v37  ;;  %v387_v43 = vpop.f32.mrb[3].mxu0  ;;  %v459_v37 = vld [vmem:[%s863_s9] sm:$0xff] }
 0x21c   :  { %v396_v44 = vmul.f32 %v387_v43, %v760_v11 }
 0x21e   :  { %v398_v47 = vpack.c.bf16 %v397_v42, %v396_v44 }
 0x220   :  { %592 = vmatpush3.bf16.msra.mxu1 %v398_v47 }
 0x223   :  { %594 = vmatmul.mubr.msk.bf16.vlgmr.msra.gmra.mrb[4].mxu1 %vm414_vm7, %v401_v48 }
 0x2f6   :  { %v452_v50 = vpop.f32.mrb[4].mxu1 }
 0x2f7   :  { %v453_v11 = vadd.f32 %v452_v50, %v407_v49  ;;  %v595_v51 = vpop.f32.mrb[5].mxu1 }
 0x2f8   :  { %v455_v53 = vpop.f32.mrb[6].mxu1 }
 0x2f9   :  { %v461_v55 = vadd.f32 %v459_v37, %v453_v11  ;;  %v456_v56 = vadd.f32 %v455_v53, %v412_v52  ;;  %v596_v57 = vpop.f32.mrb[7].mxu1 }
 0x2fb   :  { %463 = vst [vmem:[%s864_s10] sm:$0xff] %v461_v55  ;;  %v462_v58 = vadd.f32 %v460_v54, %v456_v56 }
 0x2fd   :  { %464 = vst [vmem:[%s864_s10 + $0x8] sm:$0xff] %v462_v58 }

// kernel: tile.13
= control target key start
LH: loop header
LB: loop body
LE: loop exit
PB: predicated region body
PF: predicated region fallthrough
CT: control target
= control target key end

     0   :  { %s22_s0 = inlined_call_operand.vmem [shape: f32[16], index: 0, kind: input, shape index: {}]   ;;  %s23_s1 = inlined_call_operand.vmem [shape: f32[4,16], index: 1, kind: output, shape index: {}]  }
   0x1   :  { %v4_v0 = vld [vmem:[%s22_s0] ss:$0 sm:$0xff] }
   0x2   :  { %5 = vst [vmem:[%s23_s1] sm:$0xf] %v4_v0 }

// kernel: tile.0
= control target key start
LH: loop header
LB: loop body
LE: loop exit
PB: predicated region body
PF: predicated region fallthrough
CT: control target
= control target key end

     0   :  { %s176_s8 = smov 125   ;;  %s177_s9 = smov 126   ;;  %vm7_vm0 = vcmask 7168   ;;  %s331_s0 = inlined_call_operand.vmem [shape: f32[4,16], index: 0, kind: input, shape index: {}]   ;;  %s332_s1 = inlined_call_operand.vmem [shape: f32[64,1], index: 1, kind: output, shape index: {}]  }
   0x1   :  { %v4_v0 = vld [vmem:[%s331_s0] sm:$0xf]  ;;  %s175_s0 = smov 127   ;;  %s178_s10 = smov 124  }
   0x2   :  { %5 = vst [vmem:[#allocation0] sm:$0xf] %v4_v0  ;;  %s179_s11 = smov 123   ;;  %s180_s12 = smov 122  }
   0x3   :  { %s181_s13 = smov 121   ;;  %s182_s14 = smov 120  }
   0x4   :  { %s183_s19 = smov 119   ;;  %s184_s20 = smov 118  }
   0x5   :  { %s185_s21 = smov 117   ;;  %s186_s22 = smov 116  }
   0x6   :  { %s187_s23 = smov 115   ;;  %s188_s24 = smov 114  }
   0x7   :  { %s189_s25 = smov 113  }
   0x9   :  { %v10_v1 = vld [vmem:[#allocation0] sm:$0xf]  }
   0xa   :  { %v26_v2 = vld [vmem:[#allocation0] sm:$0xf]   ;;  %11 = vrot.lane.b32.xlu0 %v10_v1, %s175_s0 }
   0xb   :  { %27 = vrot.lane.b32.xlu1 %v26_v2, %s176_s8  ;;  %v18_v3 = vld [vmem:[#allocation0] sm:$0xf]  }
   0xc   :  { %v34_v4 = vld [vmem:[#allocation0] sm:$0xf]  }
   0xd   :  { %v42_v5 = vld [vmem:[#allocation0] sm:$0xf]  }
   0xe   :  { %19 = vrot.lane.b32.xlu0 %v18_v3, %s177_s9  ;;  %v50_v6 = vld [vmem:[#allocation0] sm:$0xf]  }
   0xf   :  { %35 = vrot.lane.b32.xlu1 %v34_v4, %s178_s10  ;;  %v58_v7 = vld [vmem:[#allocation0] sm:$0xf]  }
  0x10   :  { %v66_v8 = vld [vmem:[#allocation0] sm:$0xf]  }
  0x11   :  { %v74_v9 = vld [vmem:[#allocation0] sm:$0xf]  }
  0x12   :  { %43 = vrot.lane.b32.xlu0 %v42_v5, %s179_s11  ;;  %v82_v10 = vld [vmem:[#allocation0] sm:$0xf]  }
  0x13   :  { %51 = vrot.lane.b32.xlu1 %v50_v6, %s180_s12  ;;  %v6_v11 = vld [vmem:[#allocation0] sm:$0xf]  }
  0x14   :  { %8 = vst.msk [vmem:[%s332_s1] ss:$16 sm:$0x3] %vm7_vm0, %v6_v11   ;;  %9 = vst.msk [vmem:[%s332_s1] ss:$16 sm:$0xc] %vm7_vm0, %v6_v11  }
  0x15   :  { %v90_v12 = vld [vmem:[#allocation0] sm:$0xf]  }
  0x16   :  { %59 = vrot.lane.b32.xlu0 %v58_v7, %s181_s13  ;;  %v98_v13 = vld [vmem:[#allocation0] sm:$0xf]  }
  0x17   :  { %67 = vrot.lane.b32.xlu1 %v66_v8, %s182_s14  ;;  %v106_v14 = vld [vmem:[#allocation0] sm:$0xf]  }
  0x18   :  { %v114_v15 = vld [vmem:[#allocation0] sm:$0xf]  }
  0x19   :  { %v122_v16 = vld [vmem:[#allocation0] sm:$0xf]  }
  0x1a   :  { %75 = vrot.lane.b32.xlu0 %v74_v9, %s183_s19 }
  0x1b   :  { %83 = vrot.lane.b32.xlu1 %v82_v10, %s184_s20 }
  0x1e   :  { %91 = vrot.lane.b32.xlu0 %v90_v12, %s185_s21 }
  0x1f   :  { %99 = vrot.lane.b32.xlu1 %v98_v13, %s186_s22 }
  0x22   :  { %107 = vrot.lane.b32.xlu0 %v106_v14, %s187_s23 }
  0x23   :  { %115 = vrot.lane.b32.xlu1 %v114_v15, %s188_s24 }
  0x26   :  { %123 = vrot.lane.b32.xlu0 %v122_v16, %s189_s25 }
  0x7c   :  { %v12_v17 = vpop.permute.xlu0 %11  }
  0x7d   :  { %v28_v18 = vpop.permute.xlu1 %27   ;;  %130 = vst.msk [vmem:[%s332_s1 + $0x1] ss:$16 sm:$0x3] %vm7_vm0, %v12_v17   ;;  %131 = vst.msk [vmem:[%s332_s1 + $0x1] ss:$16 sm:$0xc] %vm7_vm0, %v12_v17  }
  0x7e   :  { %134 = vst.msk [vmem:[%s332_s1 + $0x3] ss:$16 sm:$0x3] %vm7_vm0, %v28_v18   ;;  %135 = vst.msk [vmem:[%s332_s1 + $0x3] ss:$16 sm:$0xc] %vm7_vm0, %v28_v18  }
  0x80   :  { %v20_v19 = vpop.permute.xlu0 %19  }
  0x81   :  { %v36_v20 = vpop.permute.xlu1 %35   ;;  %132 = vst.msk [vmem:[%s332_s1 + $0x2] ss:$16 sm:$0x3] %vm7_vm0, %v20_v19   ;;  %133 = vst.msk [vmem:[%s332_s1 + $0x2] ss:$16 sm:$0xc] %vm7_vm0, %v20_v19  }
  0x82   :  { %136 = vst.msk [vmem:[%s332_s1 + $0x4] ss:$16 sm:$0x3] %vm7_vm0, %v36_v20   ;;  %137 = vst.msk [vmem:[%s332_s1 + $0x4] ss:$16 sm:$0xc] %vm7_vm0, %v36_v20  }
  0x84   :  { %v44_v21 = vpop.permute.xlu0 %43  }
  0x85   :  { %v52_v22 = vpop.permute.xlu1 %51   ;;  %138 = vst.msk [vmem:[%s332_s1 + $0x5] ss:$16 sm:$0x3] %vm7_vm0, %v44_v21   ;;  %139 = vst.msk [vmem:[%s332_s1 + $0x5] ss:$16 sm:$0xc] %vm7_vm0, %v44_v21  }
  0x86   :  { %140 = vst.msk [vmem:[%s332_s1 + $0x6] ss:$16 sm:$0x3] %vm7_vm0, %v52_v22   ;;  %141 = vst.msk [vmem:[%s332_s1 + $0x6] ss:$16 sm:$0xc] %vm7_vm0, %v52_v22  }
  0x88   :  { %v60_v23 = vpop.permute.xlu0 %59  }
  0x89   :  { %v68_v24 = vpop.permute.xlu1 %67   ;;  %142 = vst.msk [vmem:[%s332_s1 + $0x7] ss:$16 sm:$0x3] %vm7_vm0, %v60_v23   ;;  %143 = vst.msk [vmem:[%s332_s1 + $0x7] ss:$16 sm:$0xc] %vm7_vm0, %v60_v23  }
  0x8a   :  { %144 = vst.msk [vmem:[%s332_s1 + $0x8] ss:$16 sm:$0x3] %vm7_vm0, %v68_v24   ;;  %145 = vst.msk [vmem:[%s332_s1 + $0x8] ss:$16 sm:$0xc] %vm7_vm0, %v68_v24  }
  0x8c   :  { %v76_v25 = vpop.permute.xlu0 %75  }
  0x8d   :  { %v84_v26 = vpop.permute.xlu1 %83   ;;  %146 = vst.msk [vmem:[%s332_s1 + $0x9] ss:$16 sm:$0x3] %vm7_vm0, %v76_v25   ;;  %147 = vst.msk [vmem:[%s332_s1 + $0x9] ss:$16 sm:$0xc] %vm7_vm0, %v76_v25  }
  0x8e   :  { %148 = vst.msk [vmem:[%s332_s1 + $0xa] ss:$16 sm:$0x3] %vm7_vm0, %v84_v26   ;;  %149 = vst.msk [vmem:[%s332_s1 + $0xa] ss:$16 sm:$0xc] %vm7_vm0, %v84_v26  }
  0x90   :  { %v92_v27 = vpop.permute.xlu0 %91  }
  0x91   :  { %v100_v28 = vpop.permute.xlu1 %99   ;;  %150 = vst.msk [vmem:[%s332_s1 + $0xb] ss:$16 sm:$0x3] %vm7_vm0, %v92_v27   ;;  %151 = vst.msk [vmem:[%s332_s1 + $0xb] ss:$16 sm:$0xc] %vm7_vm0, %v92_v27  }
  0x92   :  { %152 = vst.msk [vmem:[%s332_s1 + $0xc] ss:$16 sm:$0x3] %vm7_vm0, %v100_v28   ;;  %153 = vst.msk [vmem:[%s332_s1 + $0xc] ss:$16 sm:$0xc] %vm7_vm0, %v100_v28  }
  0x94   :  { %v108_v29 = vpop.permute.xlu0 %107  }
  0x95   :  { %v116_v30 = vpop.permute.xlu1 %115   ;;  %154 = vst.msk [vmem:[%s332_s1 + $0xd] ss:$16 sm:$0x3] %vm7_vm0, %v108_v29   ;;  %155 = vst.msk [vmem:[%s332_s1 + $0xd] ss:$16 sm:$0xc] %vm7_vm0, %v108_v29  }
  0x96   :  { %156 = vst.msk [vmem:[%s332_s1 + $0xe] ss:$16 sm:$0x3] %vm7_vm0, %v116_v30   ;;  %157 = vst.msk [vmem:[%s332_s1 + $0xe] ss:$16 sm:$0xc] %vm7_vm0, %v116_v30  }
  0x98   :  { %v124_v31 = vpop.permute.xlu0 %123  }
  0x99   :  { %158 = vst.msk [vmem:[%s332_s1 + $0xf] ss:$16 sm:$0x3] %vm7_vm0, %v124_v31   ;;  %159 = vst.msk [vmem:[%s332_s1 + $0xf] ss:$16 sm:$0xc] %vm7_vm0, %v124_v31  }

// kernel: caon_forward.52
= control target key start
LH: loop header
LB: loop body
LE: loop exit
PB: predicated region body
PF: predicated region fallthrough
CT: control target
= control target key end

     0   :  { %v356_v0 = vmov 0   ;;  %vm179_vm0 = vcmask 130048   ;;  %s500_s0 = inlined_call_operand.vmem [shape: bf16[144,128], index: 0, kind: input, shape index: {}]   ;;  %s501_s1 = inlined_call_operand.vmem [shape: bf16[64,144], index: 1, kind: input, shape index: {}]   ;;  %s502_s2 = inlined_call_operand.vmem [shape: f32[64,1], index: 2, kind: input, shape index: {}]   ;;  %s503_s3 = inlined_call_operand.vmem [shape: f32[64,128], index: 3, kind: output, shape index: {}]  }
   0x1   :  { %192 = vmatprep.subr.bf16.mxu0 %v356_v0  ;;  %314 = vmatprep.subr.bf16.mxu1 %v356_v0  ;;  %v335_v1 = vld [vmem:[%s500_s0] sm:$0xff]   ;;  %v336_v2 = vld [vmem:[%s500_s0 + $0x8] sm:$0xff]   ;;  %v337_v3 = vld [vmem:[%s500_s0 + $0x10] sm:$0xff]  }
   0x2   :  { %334 = vset.pattern.permute.xlu1 %v356_v0  ;;  %333 = vset.pattern.permute.xlu0 %v356_v0  ;;  %v338_v4 = vld [vmem:[%s500_s0 + $0x18] sm:$0xff]   ;;  %v346_v5 = vld [vmem:[%s501_s1 + $0x4] ss:$8 sps:$4 sm:$0xff]   ;;  %v43_v8 = vld [vmem:[%s502_s2 + $0x10] sm:$0xff] }
   0x3   :  { %193 = vmatpush1.bf16.msra.mxu0 %v335_v1  ;;  %323 = vmatpush1.bf16.msra.mxu1 %v335_v1  ;;  %v349_v6 = vld [vmem:[%s501_s1 + $0x24] ss:$8 sps:$4 sm:$0xff]   ;;  %v44_v10 = vld [vmem:[%s502_s2 + $0x18] sm:$0xff]  ;;  %v341_v15 = vld [vmem:[%s500_s0 + $0x30] sm:$0xff]  }
   0x4   :  { %194 = vmatprep.subr.bf16.mxu0 %v356_v0  ;;  %315 = vmatprep.subr.bf16.mxu1 %v356_v0  ;;  %v339_v7 = vld [vmem:[%s500_s0 + $0x20] sm:$0xff]   ;;  %v42_v11 = vld [vmem:[%s502_s2 + $0x8] sm:$0xff]  ;;  %v48_v16 = vld [vmem:[%s502_s2 + $0x38] sm:$0xff] }
   0x5   :  { %310 = vmatprep.mubr.msk.bf16.mxu0 %vm179_vm0, %v346_v5  ;;  %312 = vmatprep.mubr.msk.bf16.mxu1 %vm179_vm0, %v349_v6  ;;  %v41_v9 = vld [vmem:[%s502_s2] sm:$0xff]  ;;  %v340_v12 = vld [vmem:[%s500_s0 + $0x28] sm:$0xff]   ;;  %v47_v17 = vld [vmem:[%s502_s2 + $0x30] sm:$0xff] }
   0x6   :  { %61 = vperm.xlu1 %334, %v43_v8   ;;  %51 = vperm.xlu0 %333, %v41_v9   ;;  %v46_v13 = vld [vmem:[%s502_s2 + $0x28] sm:$0xff]  ;;  %v45_v14 = vld [vmem:[%s502_s2 + $0x20] sm:$0xff]  ;;  %v342_v18 = vld [vmem:[%s500_s0 + $0x38] sm:$0xff]  }
   0x7   :  { %195 = vmatpush1.bf16.msra.mxu0 %v336_v2  ;;  %324 = vmatpush1.bf16.msra.mxu1 %v336_v2  ;;  %v343_v19 = vld [vmem:[%s500_s0 + $0x40] sm:$0xff]   ;;  %v350_v22 = vld [vmem:[%s501_s1 + $0x14] ss:$8 sps:$4 sm:$0xff]   ;;  %v354_v24 = vld [vmem:[%s501_s1 + $0x10] ss:$8 sps:$4 sm:$0xff]  }
   0x8   :  { %196 = vmatprep.subr.bf16.mxu0 %v356_v0  ;;  %316 = vmatprep.subr.bf16.mxu1 %v356_v0  ;;  %v344_v20 = vld [vmem:[%s501_s1] ss:$8 sps:$4 sm:$0xff]   ;;  %v352_v23 = vld [vmem:[%s501_s1 + $0x34] ss:$8 sps:$4 sm:$0xff]   ;;  %v355_v25 = vld [vmem:[%s501_s1 + $0x30] ss:$8 sps:$4 sm:$0xff]  }
   0x9   :  { %v347_v21 = vld [vmem:[%s501_s1 + $0x20] ss:$8 sps:$4 sm:$0xff]  }
   0xa   :  { %66 = vperm.xlu1 %334, %v44_v10   ;;  %56 = vperm.xlu0 %333, %v42_v11  }
   0xb   :  { %197 = vmatpush1.bf16.msra.mxu0 %v337_v3  ;;  %325 = vmatpush1.bf16.msra.mxu1 %v337_v3 }
   0xc   :  { %198 = vmatprep.subr.bf16.mxu0 %v356_v0  ;;  %317 = vmatprep.subr.bf16.mxu1 %v356_v0 }
   0xe   :  { %76 = vperm.xlu1 %334, %v46_v13   ;;  %71 = vperm.xlu0 %333, %v45_v14  }
   0xf   :  { %199 = vmatpush1.bf16.msra.mxu0 %v338_v4  ;;  %326 = vmatpush1.bf16.msra.mxu1 %v338_v4 }
  0x10   :  { %200 = vmatprep.subr.bf16.mxu0 %v356_v0  ;;  %318 = vmatprep.subr.bf16.mxu1 %v356_v0 }
  0x12   :  { %86 = vperm.xlu1 %334, %v48_v16   ;;  %81 = vperm.xlu0 %333, %v47_v17  }
  0x13   :  { %201 = vmatpush1.bf16.msra.mxu0 %v339_v7  ;;  %327 = vmatpush1.bf16.msra.mxu1 %v339_v7 }
  0x14   :  { %202 = vmatprep.subr.bf16.mxu0 %v356_v0  ;;  %319 = vmatprep.subr.bf16.mxu1 %v356_v0 }
  0x17   :  { %203 = vmatpush1.bf16.msra.mxu0 %v340_v12  ;;  %328 = vmatpush1.bf16.msra.mxu1 %v340_v12 }
  0x18   :  { %204 = vmatprep.subr.bf16.mxu0 %v356_v0  ;;  %320 = vmatprep.subr.bf16.mxu1 %v356_v0 }
  0x1b   :  { %205 = vmatpush1.bf16.msra.mxu0 %v341_v15  ;;  %329 = vmatpush1.bf16.msra.mxu1 %v341_v15 }
  0x1c   :  { %206 = vmatprep.subr.bf16.mxu0 %v356_v0  ;;  %321 = vmatprep.subr.bf16.mxu1 %v356_v0 }
  0x1f   :  { %207 = vmatpush1.bf16.msra.mxu0 %v342_v18  ;;  %330 = vmatpush1.bf16.msra.mxu1 %v342_v18 }
  0x20   :  { %208 = vmatprep.subr.bf16.mxu0 %v356_v0  ;;  %322 = vmatprep.subr.bf16.mxu1 %v356_v0 }
  0x23   :  { %209 = vmatpush1.bf16.msra.mxu0 %v343_v19  ;;  %331 = vmatpush1.bf16.msra.mxu1 %v343_v19 }
  0x26   :  { %225 = vmatmul.mubr.bf16.vlgmr.msra.gmra.mrb[0].mxu0 %v344_v20  ;;  %241 = vmatmul.mubr.bf16.vlgmr.msra.gmra.mrb[0].mxu1 %v347_v21 }
  0x27   :  { %311 = vmatprep.mubr.msk.bf16.mxu0 %vm179_vm0, %v350_v22  ;;  %313 = vmatprep.mubr.msk.bf16.mxu1 %vm179_vm0, %v352_v23 }
  0x2e   :  { %233 = vmatmul.mubr.bf16.gmra.mrb[4].mxu0 %v354_v24  ;;  %249 = vmatmul.mubr.bf16.gmra.mrb[4].mxu1 %v355_v25 }
  0x85   :  { %v52_v26 = vpop.permute.xlu0 %51  ;;  %v62_v27 = vpop.permute.xlu1 %61 }
  0x89   :  { %v57_v28 = vpop.permute.xlu0 %56  ;;  %v67_v29 = vpop.permute.xlu1 %66 }
  0x8d   :  { %v72_v30 = vpop.permute.xlu0 %71  ;;  %v77_v39 = vpop.permute.xlu1 %76 }
  0x91   :  { %v82_v50 = vpop.permute.xlu0 %81  ;;  %v87_v61 = vpop.permute.xlu1 %86 }
  0xf9   :  { %v226_v31 = vpop.f32.mrb[0].mxu0  ;;  %v242_v32 = vpop.f32.mrb[0].mxu1 }
  0xfa   :  { %v227_v33 = vadd.f32 %v226_v31, %v52_v26  ;;  %v243_v34 = vadd.f32 %v242_v32, %v72_v30  ;;  %v228_v35 = vpop.f32.mrb[1].mxu0  ;;  %v244_v36 = vpop.f32.mrb[1].mxu1 }
  0xfb   :  { %v229_v37 = vpop.f32.mrb[2].mxu0  ;;  %v245_v38 = vpop.f32.mrb[2].mxu1 }
  0xfc   :  { %vm257_vm1 = vcmp.ge.f32.partialorder %v227_v33, 0.0  ;;  %v265_v40 = vmul.f32 0.2, %v227_v33  ;;  %vm261_vm2 = vcmp.ge.f32.partialorder %v243_v34, 0.0  ;;  %v269_v41 = vmul.f32 0.2, %v243_v34 }
  0xfd   :  { %v230_v42 = vadd.f32 %v229_v37, %v57_v28  ;;  %v246_v43 = vadd.f32 %v245_v38, %v77_v39  ;;  %v231_v44 = vpop.f32.mrb[3].mxu0  ;;  %v247_v45 = vpop.f32.mrb[3].mxu1 }
  0xfe   :  { %v273_v46 = vsel %vm257_vm1, %v227_v33, %v265_v40  ;;  %v277_v47 = vsel %vm261_vm2, %v243_v34, %v269_v41 }
  0xff   :  { %281 = vst [vmem:[%s503_s3] sm:$0xff] %v273_v46  ;;  %285 = vst [vmem:[%s503_s3 + $0x20] sm:$0xff] %v277_v47  ;;  %vm258_vm3 = vcmp.ge.f32.partialorder %v230_v42, 0.0  ;;  %v266_v48 = vmul.f32 0.2, %v230_v42  ;;  %vm262_vm4 = vcmp.ge.f32.partialorder %v246_v43, 0.0 }
 0x100   :  { %v270_v49 = vmul.f32 0.2, %v246_v43 }
 0x101   :  { %v274_v51 = vsel %vm258_vm3, %v230_v42, %v266_v48  ;;  %v234_v53 = vpop.f32.mrb[4].mxu0  ;;  %v250_v54 = vpop.f32.mrb[4].mxu1 }
 0x102   :  { %v278_v52 = vsel %vm262_vm4, %v246_v43, %v270_v49  ;;  %282 = vst [vmem:[%s503_s3 + $0x8] sm:$0xff] %v274_v51  ;;  %v235_v55 = vadd.f32 %v234_v53, %v62_v27  ;;  %v251_v56 = vadd.f32 %v250_v54, %v82_v50  ;;  %v236_v57 = vpop.f32.mrb[5].mxu0  ;;  %v252_v58 = vpop.f32.mrb[5].mxu1 }
 0x103   :  { %286 = vst [vmem:[%s503_s3 + $0x28] sm:$0xff] %v278_v52  ;;  %v237_v59 = vpop.f32.mrb[6].mxu0  ;;  %v253_v60 = vpop.f32.mrb[6].mxu1 }
 0x104   :  { %vm259_vm5 = vcmp.ge.f32.partialorder %v235_v55, 0.0  ;;  %v267_v62 = vmul.f32 0.2, %v235_v55  ;;  %vm263_vm6 = vcmp.ge.f32.partialorder %v251_v56, 0.0  ;;  %v271_v63 = vmul.f32 0.2, %v251_v56 }
 0x105   :  { %v238_v0 = vadd.f32 %v237_v59, %v67_v29  ;;  %v254_v1 = vadd.f32 %v253_v60, %v87_v61  ;;  %v239_v2 = vpop.f32.mrb[7].mxu0  ;;  %v255_v3 = vpop.f32.mrb[7].mxu1 }
 0x106   :  { %v275_v4 = vsel %vm259_vm5, %v235_v55, %v267_v62  ;;  %v279_v5 = vsel %vm263_vm6, %v251_v56, %v271_v63 }
 0x107   :  { %283 = vst [vmem:[%s503_s3 + $0x10] sm:$0xff] %v275_v4  ;;  %287 = vst [vmem:[%s503_s3 + $0x30] sm:$0xff] %v279_v5  ;;  %vm260_vm7 = vcmp.ge.f32.partialorder %v238_v0, 0.0  ;;  %v268_v6 = vmul.f32 0.2, %v238_v0  ;;  %vm264_vm8 = vcmp.ge.f32.partialorder %v254_v1, 0.0 }
 0x108   :  { %v272_v7 = vmul.f32 0.2, %v254_v1 }
 0x109   :  { %v276_v8 = vsel %vm260_vm7, %v238_v0, %v268_v6 }
 0x10a   :  { %v280_v9 = vsel %vm264_vm8, %v254_v1, %v272_v7  ;;  %284 = vst [vmem:[%s503_s3 + $0x18] sm:$0xff] %v276_v8 }
 0x10b   :  { %288 = vst [vmem:[%s503_s3 + $0x38] sm:$0xff] %v280_v9 }

// kernel: caon_forward.53
= control target key start
LH: loop header
LB: loop body
LE: loop exit
PB: predicated region body
PF: predicated region fallthrough
CT: control target
= control target key end

     0   :  { %s721_s15 = smov 0   ;;  %s723_s16 = smov 0   ;;  %s822_s0 = inlined_call_operand.vmem [shape: bf16[144,512], index: 0, kind: input, shape index: {}]   ;;  %s823_s1 = inlined_call_operand.vmem [shape: bf16[3,144], index: 1, kind: input, shape index: {}]   ;;  %s824_s2 = inlined_call_operand.vmem [shape: f32[3,1], index: 2, kind: input, shape index: {}]   ;;  %s825_s3 = inlined_call_operand.vmem [shape: f32[3,512], index: 3, kind: input, shape index: {}]   ;;  %s826_s4 = inlined_call_operand.vmem [shape: f32[3,512], index: 4, kind: output, shape index: {}]  }
   0x1   :  { %s725_s17 = smov 0  }
   0x2 LB: > { %s581_s18 = sadd.s32 4294967295, %s693_s17   ;;  %s738_s19 = sadd.s32 1, %s693_s17   ;;  %s693_s17 = sphi %s725_s17, %s829_s17   ;;  %s689_s16 = sphi %s723_s16, %s828_s16   ;;  %s685_s15 = sphi %s721_s15, %s827_s15  }
   0x3   : > { %s18_s20 = ssub.s32 %s693_s17, %s738_s19  ;;  %s21_s21 = sadd.s32 1, %s689_s16 }
   0x4   : > { %p19_p0 = scmp.eq.s32.totalorder %s18_s20, 0  ;;  %p28_p1 = scmp.ne.s32.totalorder %s689_s16, %s685_s15 }
   0x5   : > { %p29_p2 = scmp.eq.s32.totalorder %s693_s17, 0  ;;  %p584_p4 = scmp.ge.s32.totalorder %s693_s17, 2 }
   0x6   : > { %s747_s22 = scalar_select %p19_p0, %s689_s16, %s21_s21  }
   0x7   : > { %p30_p3 = por %p29_p2, %p28_p1  ;;  %154 = sbr.rel (%p584_p4) target bundleno = 27 (0x1b), region = 24 }
   0xe   : > { %157 = sbr.rel (!%p30_p3) target bundleno = 27 (0x1b), region = 28  ;;  %s159_s23 = sand.u32 (%p30_p3), 1, %s689_s16  }
   0xf   : > { %s614_s24 = sshll.u32 (%p30_p3), %s693_s17, 3  ;;  %s615_s25 = smul.u32 (%p30_p3), 144, %s159_s23 }
  0x10   : > { %s755_s28 = scalar_lea.vmem (%p30_p3), %s822_s0, %s614_s24 }
  0x11   : > { %v226_v0 = vld [vmem:[%s755_s28] sm:$0xff] (%p30_p3)  ;;  %v228_v1 = vld [vmem:[%s755_s28 + $0x10] sm:$0xff] (%p30_p3)  ;;  %s161_s29 = scalar_lea.vmem (%p30_p3), [#allocation2], %s615_s25 }
  0x12   : > { %v230_v2 = vld [vmem:[%s755_s28 + $0x20] sm:$0xff] (%p30_p3)  ;;  %v232_v3 = vld [vmem:[%s755_s28 + $0x30] sm:$0xff] (%p30_p3)  ;;  %227 = vst [vmem:[%s161_s29] sm:$0xff] (%p30_p3), %v226_v0  ;;  %229 = vst [vmem:[%s161_s29 + $0x8] sm:$0xff] (%p30_p3), %v228_v1 }
  0x13   : > { %v234_v4 = vld [vmem:[%s755_s28 + $0x40] sm:$0xff] (%p30_p3)  ;;  %v236_v5 = vld [vmem:[%s755_s28 + $0x50] sm:$0xff] (%p30_p3)  ;;  %231 = vst [vmem:[%s161_s29 + $0x10] sm:$0xff] (%p30_p3), %v230_v2  ;;  %233 = vst [vmem:[%s161_s29 + $0x18] sm:$0xff] (%p30_p3), %v232_v3 }
  0x14   : > { %235 = vst [vmem:[%s161_s29 + $0x20] sm:$0xff] (%p30_p3), %v234_v4  ;;  %237 = vst [vmem:[%s161_s29 + $0x28] sm:$0xff] (%p30_p3), %v236_v5  ;;  %v238_v6 = vld [vmem:[%s755_s28 + $0x60] sm:$0xff] (%p30_p3)  ;;  %v240_v7 = vld [vmem:[%s755_s28 + $0x70] sm:$0xff] (%p30_p3) }
  0x15   : > { %v242_v8 = vld [vmem:[%s755_s28 + $0x80] sm:$0xff]  ;;  %239 = vst [vmem:[%s161_s29 + $0x30] sm:$0xff] %v238_v6  ;;  %241 = vst [vmem:[%s161_s29 + $0x38] sm:$0xff] %v240_v7  ;;  %v244_v9 = vld [vmem:[%s755_s28 + $0x90] sm:$0xff] }
  0x16   : > { %243 = vst [vmem:[%s161_s29 + $0x40] sm:$0xff] %v242_v8  ;;  %v246_v10 = vld [vmem:[%s755_s28 + $0xa0] sm:$0xff]  ;;  %v248_v11 = vld [vmem:[%s755_s28 + $0xb0] sm:$0xff]  ;;  %245 = vst [vmem:[%s161_s29 + $0x48] sm:$0xff] %v244_v9 }
  0x17   : > { %247 = vst [vmem:[%s161_s29 + $0x50] sm:$0xff] %v246_v10  ;;  %249 = vst [vmem:[%s161_s29 + $0x58] sm:$0xff] %v248_v11  ;;  %v250_v12 = vld [vmem:[%s755_s28 + $0xc0] sm:$0xff]  ;;  %v252_v13 = vld [vmem:[%s755_s28 + $0xd0] sm:$0xff] }
  0x18   : > { %v254_v14 = vld [vmem:[%s755_s28 + $0xe0] sm:$0xff]  ;;  %251 = vst [vmem:[%s161_s29 + $0x60] sm:$0xff] %v250_v12  ;;  %253 = vst [vmem:[%s161_s29 + $0x68] sm:$0xff] %v252_v13  ;;  %v256_v15 = vld [vmem:[%s755_s28 + $0xf0] sm:$0xff] }
  0x19   : > { %255 = vst [vmem:[%s161_s29 + $0x70] sm:$0xff] %v254_v14  ;;  %v258_v16 = vld [vmem:[%s755_s28 + $0x100] sm:$0xff]  ;;  %v260_v17 = vld [vmem:[%s755_s28 + $0x110] sm:$0xff]  ;;  %257 = vst [vmem:[%s161_s29 + $0x78] sm:$0xff] %v256_v15 }
  0x1a   : > { %259 = vst [vmem:[%s161_s29 + $0x80] sm:$0xff] %v258_v16  ;;  %261 = vst [vmem:[%s161_s29 + $0x88] sm:$0xff] %v260_v17 }
  0x1b PF: > { %p587_p5 = scmp.ge.s32.totalorder %s693_s17, 1  ;;  %p275_p6 = scmp.lt.s32.totalorder %s693_s17, 3 }
  0x1d   : > { %p276_p7 = pnand %p587_p5, %p275_p6 }
  0x1e   : > { %s282_s30 = sand.u32 (!%p276_p7), 1, %s685_s15   ;;  %v592_v18 = vld.sshfl [vmem:[%s823_s1] sm:$0x33 pattern:$0x76325410] (!%p276_p7)  ;;  %vm451_vm0 = vcmask (!%p276_p7), 130048  }
  0x1f   : > { %279 = sbr.rel (%p276_p7) target bundleno = 292 (0x124), region = 70  ;;  %v359_v19 = vcombine.high (!%p276_p7), %v592_v18, %v592_v18  ;;  %v345_v20 = vld [vmem:[%s824_s2] sm:$0x7] (!%p276_p7)  ;;  %v695_v21 = vmov (!%p276_p7), 0   ;;  %s588_s11 = sshll.u32 (!%p276_p7), %s581_s18, 1 }
  0x20   : > { %s616_s7 = smul.u32 (!%p276_p7), 144, %s282_s30  ;;  %642 = vset.pattern.permute.xlu0 (!%p276_p7), %v695_v21  ;;  %p314_p8 = scmp.lt.s32.totalorder (!%p276_p7), %s588_s11, 3 }
  0x21   : > { %611 = vmatprep.mubr.msk.bf16.mxu0 (!%p276_p7), %vm451_vm0, %v359_v19  ;;  %348 = vperm.xlu0 (!%p276_p7), %642, %v345_v20  }
  0x22   : > { %s784_s10 = scalar_lea.vmem (!%p276_p7), [#allocation2], %s616_s7 }
  0x23   : > { %v643_v22 = vld [vmem:[%s784_s10 + $0x4] ss:$8 sps:$4 sm:$0xff] (!%p276_p7)   ;;  %v645_v23 = vld [vmem:[%s784_s10] ss:$8 sps:$4 sm:$0xff] (!%p276_p7)   ;;  %v646_v24 = vld [vmem:[%s784_s10 + $0x14] ss:$8 sps:$4 sm:$0xff] (!%p276_p7)  }
  0x24   : > { %455 = vmatprep.subr.bf16.mxu0 (!%p276_p7), %v643_v22  ;;  %v648_v25 = vld [vmem:[%s784_s10 + $0x10] ss:$8 sps:$4 sm:$0xff] (!%p276_p7)   ;;  %v649_v26 = vld [vmem:[%s784_s10 + $0x24] ss:$8 sps:$4 sm:$0xff] (!%p276_p7)   ;;  %v651_v27 = vld [vmem:[%s784_s10 + $0x20] ss:$8 sps:$4 sm:$0xff] (!%p276_p7)  }
  0x25   : > { %456 = vmatpush1.bf16.msra.mxu0 (!%p276_p7), %v645_v23  ;;  %v652_v28 = vld [vmem:[%s784_s10 + $0x34] ss:$8 sps:$4 sm:$0xff] (!%p276_p7)   ;;  %v654_v29 = vld [vmem:[%s784_s10 + $0x30] ss:$8 sps:$4 sm:$0xff] (!%p276_p7)   ;;  %v655_v30 = vld [vmem:[%s784_s10 + $0x44] ss:$8 sps:$4 sm:$0xff] (!%p276_p7)  }
  0x26   : > { %457 = vmatprep.subr.bf16.mxu0 %v646_v24  ;;  %v657_v31 = vld [vmem:[%s784_s10 + $0x40] ss:$8 sps:$4 sm:$0xff]   ;;  %v658_v32 = vld [vmem:[%s784_s10 + $0x54] ss:$8 sps:$4 sm:$0xff]   ;;  %v660_v33 = vld [vmem:[%s784_s10 + $0x50] ss:$8 sps:$4 sm:$0xff]  }
  0x27   : > { %v661_v34 = vld [vmem:[%s784_s10 + $0x64] ss:$8 sps:$4 sm:$0xff]   ;;  %v663_v35 = vld [vmem:[%s784_s10 + $0x60] ss:$8 sps:$4 sm:$0xff]   ;;  %v664_v36 = vld [vmem:[%s784_s10 + $0x74] ss:$8 sps:$4 sm:$0xff]  }
  0x28   : > { %v666_v37 = vld [vmem:[%s784_s10 + $0x70] ss:$8 sps:$4 sm:$0xff]   ;;  %v667_v38 = vld [vmem:[%s784_s10 + $0x84] ss:$8 sps:$4 sm:$0xff]   ;;  %v669_v39 = vld [vmem:[%s784_s10 + $0x80] ss:$8 sps:$4 sm:$0xff]  }
  0x29   : > { %458 = vmatpush1.bf16.msra.mxu0 %v648_v25  ;;  %s831_s11 = smov (!%p314_p8, %s588_s11), 3 }
  0x2a   : > { %459 = vmatprep.subr.bf16.mxu0 %v649_v26  ;;  %s589_s12 = sshll.u32 %s831_s11, 2 }
  0x2b   : > { %s317_s15 = scalar_lea.vmem %s825_s3, %s589_s12  ;;  %s323_s20 = scalar_lea.vmem %s826_s4, %s589_s12 }
  0x2c   : > { %v496_v40 = vld [vmem:[%s317_s15] sm:$0x77] }
  0x2d   : > { %460 = vmatpush1.bf16.msra.mxu0 %v651_v27  ;;  %v498_v43 = vcombine.high %v496_v40, %v496_v40 }
  0x2e   : > { %461 = vmatprep.subr.bf16.mxu0 %v652_v28 }
  0x31   : > { %462 = vmatpush1.bf16.msra.mxu0 %v654_v29 }
  0x32   : > { %463 = vmatprep.subr.bf16.mxu0 %v655_v30 }
  0x35   : > { %464 = vmatpush1.bf16.msra.mxu0 %v657_v31 }
  0x36   : > { %465 = vmatprep.subr.bf16.mxu0 %v658_v32 }
  0x39   : > { %466 = vmatpush1.bf16.msra.mxu0 %v660_v33 }
  0x3a   : > { %467 = vmatprep.subr.bf16.mxu0 %v661_v34 }
  0x3d   : > { %468 = vmatpush1.bf16.msra.mxu0 %v663_v35 }
  0x3e   : > { %469 = vmatprep.subr.bf16.mxu0 %v664_v36 }
  0x41   : > { %470 = vmatpush1.bf16.msra.mxu0 %v666_v37 }
  0x42   : > { %471 = vmatprep.subr.bf16.mxu0 %v667_v38 }
  0x45   : > { %472 = vmatpush1.bf16.msra.mxu0 %v669_v39 }
  0x48   : > { %488 = vmatmul.mubr.bf16.vlgmr.msra.gmra.mrb[0].mxu0 %v592_v18 }
  0xa0   : > { %v349_v41 = vpop.permute.xlu0 %348 }
 0x11b   : > { %v489_v42 = vpop.f32.mrb[0].mxu0 }
 0x11c   : > { %v490_v44 = vadd.f32 %v489_v42, %v349_v41  ;;  %v491_v45 = vpop.f32.mrb[1].mxu0 }
 0x11d   : > { %v492_v46 = vadd.f32 %v491_v45, %v349_v41  ;;  %v493_v47 = vpop.f32.mrb[2].mxu0 }
 0x11e   : > { %v500_v48 = vadd.f32 %v496_v40, %v490_v44  ;;  %v494_v49 = vpop.f32.mrb[3].mxu0 }
 0x11f   : > { %v501_v50 = vadd.f32 %v498_v43, %v492_v46 }
 0x121   : > { %v504_v51 = vcombine.low %v500_v48, %v501_v50 }
 0x123   : > { %506 = vst [vmem:[%s323_s20] sm:$0x77] %v504_v51 }
 0x124 PF: > { %p11_p9 = scmp.ge.s32.totalorder %s738_s19, 4   ;;  %s827_s15 = smov %s689_s16 }
 0x125   : > { %s828_s16 = smov %s747_s22  ;;  %s829_s17 = smov %s738_s19 }
 0x126   :  { %13 = sbr.rel (!%p11_p9) target bundleno = 2 (0x2), region = 112 }

</bundles_post_ra>
